<compile_context>
chip_gen: v7x
topology: tpu7x:2x2x1
jax: 0.10.0
libtpu: 0.0.40
codegen_flags: <defaults>
</compile_context>

<pallas_src>
import functools

import jax
import jax.numpy as jnp
from jax.experimental import pallas as pl
from jax.experimental.pallas import tpu as pltpu


def _conv_relu_kernel(x_ref, w_ref, b_ref, o_ref, acc_ref, *,
                      kh, kw, wp, stride, m_full):
    """Fused KHxKW conv + bias + ReLU for one padded image plane.

    x_ref:   (1, FLAT, C)       bf16  zero-padded input, FLAT = HP_alloc * WP
    w_ref:   (KH*KW, C, OCP)    bf16  per-tap weight matrices, OC padded to 128
    b_ref:   (1, OCP)           f32
    o_ref:   (1, M_FULL, OCP)   f32   M_FULL = OH * WP (cols >= OW are garbage)
    acc_ref: (M_FULL, OCP)      f32   VMEM scratch accumulator
    """
    for i in range(kh):
        for j in range(kw):
            off = i * wp + j
            if stride == 1:
                sl = pl.ds(off, m_full)
            else:
                sl = pl.ds(off, m_full, stride=stride)
            xs = x_ref[0, sl, :]                              # (M_FULL, C) bf16
            contrib = jnp.dot(xs, w_ref[i * kw + j],          # (M_FULL, OCP) f32
                              preferred_element_type=jnp.float32)
            if i == 0 and j == 0:
                acc_ref[...] = contrib
            else:
                acc_ref[...] += contrib
    out = acc_ref[...] + b_ref[...]                           # bias broadcast
    o_ref[0] = jnp.maximum(out, 0.0).astype(o_ref.dtype)      # ReLU, lane-dense store


@functools.partial(jax.jit, static_argnames=("stride", "padding"))
def conv_block_forward(x, weight, bias, *, stride=1, padding=1):
    """PyTorch ConvBlock forward: ReLU(Conv2d(x)).  NCHW in, NCHW out."""
    n, c, h, w = x.shape
    oc, _, kh, kw = weight.shape

    hp, wp = h + 2 * padding, w + 2 * padding
    oh = (hp - kh) // stride + 1
    ow = (wp - kw) // stride + 1
    m_full = oh * wp          # compute OH x WP positions; cols >= OW are discarded

    # Furthest flattened row any tap may read (including the garbage columns);
    # pad H a bit further so those reads stay in-bounds (they read zeros).
    last_row = stride * (m_full - 1) + (kh - 1) * wp + (kw - 1)
    hp_alloc = max(hp, -(-(last_row + 1) // wp))
    flat = hp_alloc * wp

    # Single pass over the input: spatial zero-pad, flatten H,W, cast to bf16.
    x_pad = jnp.pad(
        x, ((0, 0), (0, 0),
            (padding, hp_alloc - h - padding), (padding, padding)))
    x_flat = x_pad.reshape(n, c, hp_alloc, wp)
    x_flat = jnp.transpose(x_flat, (0, 2, 3, 1)).reshape(n, flat, c)
    x_flat = x_flat.astype(jnp.bfloat16)

    # Per-tap weights: w_taps[i*KW+j, c, o] = weight[o, c, i, j]; pad OC -> 128.
    ocp = -(-oc // 128) * 128
    w_taps = jnp.transpose(weight, (2, 3, 1, 0)).reshape(kh * kw, c, oc)
    w_taps = jnp.pad(w_taps, ((0, 0), (0, 0), (0, ocp - oc))).astype(jnp.bfloat16)
    b_row = jnp.pad(bias, (0, ocp - oc)).reshape(1, ocp).astype(jnp.float32)

    kernel = functools.partial(_conv_relu_kernel, kh=kh, kw=kw, wp=wp,
                               stride=stride, m_full=m_full)

    flops = 2 * n * m_full * c * kh * kw * ocp
    bytes_accessed = (x_flat.size * 2 + w_taps.size * 2 + b_row.size * 4
                      + n * m_full * ocp * 4)

    y = pl.pallas_call(
        kernel,
        out_shape=jax.ShapeDtypeStruct((n, m_full, ocp), jnp.float32),
        grid_spec=pltpu.PrefetchScalarGridSpec(
            num_scalar_prefetch=0,
            grid=(n,),
            in_specs=[
                pl.BlockSpec((1, flat, c), lambda b: (b, 0, 0)),
                pl.BlockSpec((kh * kw, c, ocp), lambda b: (0, 0, 0)),
                pl.BlockSpec((1, ocp), lambda b: (0, 0)),
            ],
            out_specs=pl.BlockSpec((1, m_full, ocp), lambda b: (b, 0, 0)),
            scratch_shapes=[pltpu.VMEM((m_full, ocp), jnp.float32)],
        ),
        compiler_params=pltpu.CompilerParams(
            dimension_semantics=("parallel",)),
        cost_estimate=pl.CostEstimate(
            flops=flops, transcendentals=0, bytes_accessed=bytes_accessed),
    )(x_flat, w_taps, b_row)

    # (N, OH*WP, OCP) -> drop garbage columns & padded channels -> NCHW.
    out = y.reshape(n, oh, wp, ocp)[:, :, :ow, :oc]
    out = jnp.transpose(out, (0, 3, 1, 2))
    return out


if __name__ == "__main__":
    # ConvBlock(in_channel=4, out_channel=8, kernel_size=3, stride=1, padding=1)
    N, C, H, W = 2, 4, 16, 16
    OC, KH, KW = 8, 3, 3
    STRIDE, PADDING = 1, 1

    key = jax.random.PRNGKey(0)
    kx, kw_, kb = jax.random.split(key, 3)

    x = jax.random.normal(kx, (N, C, H, W), dtype=jnp.float32)
    fan_in = C * KH * KW
    weight = jax.random.normal(kw_, (OC, C, KH, KW), dtype=jnp.float32) * (
        (2.0 / fan_in) ** 0.5)
    bias = jax.random.normal(kb, (OC,), dtype=jnp.float32) * 0.01

    out = conv_block_forward(x, weight, bias, stride=STRIDE, padding=PADDING)
    out = jax.block_until_ready(out)

    # Reference: same bf16-rounded operands (kernel accumulates in f32).
    xb = x.astype(jnp.bfloat16).astype(jnp.float32)
    wb = weight.astype(jnp.bfloat16).astype(jnp.float32)
    ref = jax.lax.conv_general_dilated(
        xb, wb, window_strides=(STRIDE, STRIDE),
        padding=((PADDING, PADDING), (PADDING, PADDING)),
        dimension_numbers=("NCHW", "OIHW", "NCHW"),
        precision=jax.lax.Precision.HIGHEST)
    ref = jnp.maximum(ref + bias.reshape(1, OC, 1, 1), 0.0)

    assert out.shape == (N, OC, H, W)
    assert jnp.allclose(out, ref, atol=2e-2, rtol=2e-2), float(
        jnp.max(jnp.abs(out - ref)))

    print("KERNEL_OK")
</pallas_src>

<mosaic_0001>
module attributes {stable_mosaic.version = 11 : i64} {
  func.func @_conv_relu_kernel(%arg0: i32, %arg1: memref<1x342x4xbf16, #tpu.memory_space<vmem>>, %arg2: memref<9x4x128xbf16, #tpu.memory_space<vmem>>, %arg3: memref<1x128xf32, #tpu.memory_space<vmem>>, %arg4: memref<1x288x128xf32, #tpu.memory_space<vmem>>, %arg5: memref<288x128xf32, #tpu.memory_space<vmem>>) attributes {dimension_semantics = [#tpu.dimension_semantics<parallel>], iteration_bounds = array<i64: 2>, scalar_prefetch = 0 : i64, scratch_operands = 1 : i64, tpu.core_type = #tpu.core_type<tc>, window_params = [{transform_indices = @transform_0, window_bounds = array<i64: 1, 342, 4>}, {pipeline_mode = #tpu.pipeline_mode<synchronous>, transform_indices = @transform_1, window_bounds = array<i64: 9, 4, 128>}, {pipeline_mode = #tpu.pipeline_mode<synchronous>, transform_indices = @transform_2, window_bounds = array<i64: 1, 128>}, {transform_indices = @transform_3, window_bounds = array<i64: 1, 288, 128>}]} {
    %c0 = arith.constant 0 : index
    %c0_0 = arith.constant 0 : index
    %c0_1 = arith.constant 0 : index
    %0 = vector.load %arg1[%c0, %c0_0, %c0_1] : memref<1x342x4xbf16, #tpu.memory_space<vmem>>, vector<1x288x4xbf16>
    %1 = vector.shape_cast %0 : vector<1x288x4xbf16> to vector<288x4xbf16>
    %c0_2 = arith.constant 0 : index
    %c0_3 = arith.constant 0 : index
    %c0_4 = arith.constant 0 : index
    %2 = vector.load %arg2[%c0_2, %c0_3, %c0_4] : memref<9x4x128xbf16, #tpu.memory_space<vmem>>, vector<1x4x128xbf16>
    %3 = vector.shape_cast %2 : vector<1x4x128xbf16> to vector<4x128xbf16>
    %cst = arith.constant dense<0.000000e+00> : vector<288x128xf32>
    %4 = tpu.matmul %1, %3, %cst {dimension_numbers = #tpu.dot_dimension_numbers<[1], [0], [0], [1], [0, 0, 1, 1], [], []>} : vector<288x4xbf16>, vector<4x128xbf16>, vector<288x128xf32> -> vector<288x128xf32>
    %c0_5 = arith.constant 0 : index
    %c0_6 = arith.constant 0 : index
    %5 = vector.load %arg5[%c0_5, %c0_6] : memref<288x128xf32, #tpu.memory_space<vmem>>, vector<288x128xf32>
    tpu.vector_store %arg5[%c0_5, %c0_6], %4 {strides = array<i32>} : memref<288x128xf32, #tpu.memory_space<vmem>>, vector<288x128xf32>,
    %c0_7 = arith.constant 0 : index
    %c1 = arith.constant 1 : index
    %c0_8 = arith.constant 0 : index
    %6 = vector.load %arg1[%c0_7, %c1, %c0_8] : memref<1x342x4xbf16, #tpu.memory_space<vmem>>, vector<1x288x4xbf16>
    %7 = vector.shape_cast %6 : vector<1x288x4xbf16> to vector<288x4xbf16>
    %c1_9 = arith.constant 1 : index
    %c0_10 = arith.constant 0 : index
    %c0_11 = arith.constant 0 : index
    %8 = vector.load %arg2[%c1_9, %c0_10, %c0_11] : memref<9x4x128xbf16, #tpu.memory_space<vmem>>, vector<1x4x128xbf16>
    %9 = vector.shape_cast %8 : vector<1x4x128xbf16> to vector<4x128xbf16>
    %cst_12 = arith.constant dense<0.000000e+00> : vector<288x128xf32>
    %10 = tpu.matmul %7, %9, %cst_12 {dimension_numbers = #tpu.dot_dimension_numbers<[1], [0], [0], [1], [0, 0, 1, 1], [], []>} : vector<288x4xbf16>, vector<4x128xbf16>, vector<288x128xf32> -> vector<288x128xf32>
    %c0_13 = arith.constant 0 : index
    %c0_14 = arith.constant 0 : index
    %11 = vector.load %arg5[%c0_13, %c0_14] : memref<288x128xf32, #tpu.memory_space<vmem>>, vector<288x128xf32>
    %12 = arith.addf %11, %10 : vector<288x128xf32>
    %c0_15 = arith.constant 0 : index
    %c0_16 = arith.constant 0 : index
    %13 = vector.load %arg5[%c0_15, %c0_16] : memref<288x128xf32, #tpu.memory_space<vmem>>, vector<288x128xf32>
    tpu.vector_store %arg5[%c0_15, %c0_16], %12 {strides = array<i32>} : memref<288x128xf32, #tpu.memory_space<vmem>>, vector<288x128xf32>,
    %c0_17 = arith.constant 0 : index
    %c2 = arith.constant 2 : index
    %c0_18 = arith.constant 0 : index
    %14 = vector.load %arg1[%c0_17, %c2, %c0_18] : memref<1x342x4xbf16, #tpu.memory_space<vmem>>, vector<1x288x4xbf16>
    %15 = vector.shape_cast %14 : vector<1x288x4xbf16> to vector<288x4xbf16>
    %c2_19 = arith.constant 2 : index
    %c0_20 = arith.constant 0 : index
    %c0_21 = arith.constant 0 : index
    %16 = vector.load %arg2[%c2_19, %c0_20, %c0_21] : memref<9x4x128xbf16, #tpu.memory_space<vmem>>, vector<1x4x128xbf16>
    %17 = vector.shape_cast %16 : vector<1x4x128xbf16> to vector<4x128xbf16>
    %cst_22 = arith.constant dense<0.000000e+00> : vector<288x128xf32>
    %18 = tpu.matmul %15, %17, %cst_22 {dimension_numbers = #tpu.dot_dimension_numbers<[1], [0], [0], [1], [0, 0, 1, 1], [], []>} : vector<288x4xbf16>, vector<4x128xbf16>, vector<288x128xf32> -> vector<288x128xf32>
    %c0_23 = arith.constant 0 : index
    %c0_24 = arith.constant 0 : index
    %19 = vector.load %arg5[%c0_23, %c0_24] : memref<288x128xf32, #tpu.memory_space<vmem>>, vector<288x128xf32>
    %20 = arith.addf %19, %18 : vector<288x128xf32>
    %c0_25 = arith.constant 0 : index
    %c0_26 = arith.constant 0 : index
    %21 = vector.load %arg5[%c0_25, %c0_26] : memref<288x128xf32, #tpu.memory_space<vmem>>, vector<288x128xf32>
    tpu.vector_store %arg5[%c0_25, %c0_26], %20 {strides = array<i32>} : memref<288x128xf32, #tpu.memory_space<vmem>>, vector<288x128xf32>,
    %c0_27 = arith.constant 0 : index
    %c18 = arith.constant 18 : index
    %c0_28 = arith.constant 0 : index
    %22 = vector.load %arg1[%c0_27, %c18, %c0_28] : memref<1x342x4xbf16, #tpu.memory_space<vmem>>, vector<1x288x4xbf16>
    %23 = vector.shape_cast %22 : vector<1x288x4xbf16> to vector<288x4xbf16>
    %c3 = arith.constant 3 : index
    %c0_29 = arith.constant 0 : index
    %c0_30 = arith.constant 0 : index
    %24 = vector.load %arg2[%c3, %c0_29, %c0_30] : memref<9x4x128xbf16, #tpu.memory_space<vmem>>, vector<1x4x128xbf16>
    %25 = vector.shape_cast %24 : vector<1x4x128xbf16> to vector<4x128xbf16>
    %cst_31 = arith.constant dense<0.000000e+00> : vector<288x128xf32>
    %26 = tpu.matmul %23, %25, %cst_31 {dimension_numbers = #tpu.dot_dimension_numbers<[1], [0], [0], [1], [0, 0, 1, 1], [], []>} : vector<288x4xbf16>, vector<4x128xbf16>, vector<288x128xf32> -> vector<288x128xf32>
    %c0_32 = arith.constant 0 : index
    %c0_33 = arith.constant 0 : index
    %27 = vector.load %arg5[%c0_32, %c0_33] : memref<288x128xf32, #tpu.memory_space<vmem>>, vector<288x128xf32>
    %28 = arith.addf %27, %26 : vector<288x128xf32>
    %c0_34 = arith.constant 0 : index
    %c0_35 = arith.constant 0 : index
    %29 = vector.load %arg5[%c0_34, %c0_35] : memref<288x128xf32, #tpu.memory_space<vmem>>, vector<288x128xf32>
    tpu.vector_store %arg5[%c0_34, %c0_35], %28 {strides = array<i32>} : memref<288x128xf32, #tpu.memory_space<vmem>>, vector<288x128xf32>,
    %c0_36 = arith.constant 0 : index
    %c19 = arith.constant 19 : index
    %c0_37 = arith.constant 0 : index
    %30 = vector.load %arg1[%c0_36, %c19, %c0_37] : memref<1x342x4xbf16, #tpu.memory_space<vmem>>, vector<1x288x4xbf16>
    %31 = vector.shape_cast %30 : vector<1x288x4xbf16> to vector<288x4xbf16>
    %c4 = arith.constant 4 : index
    %c0_38 = arith.constant 0 : index
    %c0_39 = arith.constant 0 : index
    %32 = vector.load %arg2[%c4, %c0_38, %c0_39] : memref<9x4x128xbf16, #tpu.memory_space<vmem>>, vector<1x4x128xbf16>
    %33 = vector.shape_cast %32 : vector<1x4x128xbf16> to vector<4x128xbf16>
    %cst_40 = arith.constant dense<0.000000e+00> : vector<288x128xf32>
    %34 = tpu.matmul %31, %33, %cst_40 {dimension_numbers = #tpu.dot_dimension_numbers<[1], [0], [0], [1], [0, 0, 1, 1], [], []>} : vector<288x4xbf16>, vector<4x128xbf16>, vector<288x128xf32> -> vector<288x128xf32>
    %c0_41 = arith.constant 0 : index
    %c0_42 = arith.constant 0 : index
    %35 = vector.load %arg5[%c0_41, %c0_42] : memref<288x128xf32, #tpu.memory_space<vmem>>, vector<288x128xf32>
    %36 = arith.addf %35, %34 : vector<288x128xf32>
    %c0_43 = arith.constant 0 : index
    %c0_44 = arith.constant 0 : index
    %37 = vector.load %arg5[%c0_43, %c0_44] : memref<288x128xf32, #tpu.memory_space<vmem>>, vector<288x128xf32>
    tpu.vector_store %arg5[%c0_43, %c0_44], %36 {strides = array<i32>} : memref<288x128xf32, #tpu.memory_space<vmem>>, vector<288x128xf32>,
    %c0_45 = arith.constant 0 : index
    %c20 = arith.constant 20 : index
    %c0_46 = arith.constant 0 : index
    %38 = vector.load %arg1[%c0_45, %c20, %c0_46] : memref<1x342x4xbf16, #tpu.memory_space<vmem>>, vector<1x288x4xbf16>
    %39 = vector.shape_cast %38 : vector<1x288x4xbf16> to vector<288x4xbf16>
    %c5 = arith.constant 5 : index
    %c0_47 = arith.constant 0 : index
    %c0_48 = arith.constant 0 : index
    %40 = vector.load %arg2[%c5, %c0_47, %c0_48] : memref<9x4x128xbf16, #tpu.memory_space<vmem>>, vector<1x4x128xbf16>
    %41 = vector.shape_cast %40 : vector<1x4x128xbf16> to vector<4x128xbf16>
    %cst_49 = arith.constant dense<0.000000e+00> : vector<288x128xf32>
    %42 = tpu.matmul %39, %41, %cst_49 {dimension_numbers = #tpu.dot_dimension_numbers<[1], [0], [0], [1], [0, 0, 1, 1], [], []>} : vector<288x4xbf16>, vector<4x128xbf16>, vector<288x128xf32> -> vector<288x128xf32>
    %c0_50 = arith.constant 0 : index
    %c0_51 = arith.constant 0 : index
    %43 = vector.load %arg5[%c0_50, %c0_51] : memref<288x128xf32, #tpu.memory_space<vmem>>, vector<288x128xf32>
    %44 = arith.addf %43, %42 : vector<288x128xf32>
    %c0_52 = arith.constant 0 : index
    %c0_53 = arith.constant 0 : index
    %45 = vector.load %arg5[%c0_52, %c0_53] : memref<288x128xf32, #tpu.memory_space<vmem>>, vector<288x128xf32>
    tpu.vector_store %arg5[%c0_52, %c0_53], %44 {strides = array<i32>} : memref<288x128xf32, #tpu.memory_space<vmem>>, vector<288x128xf32>,
    %c0_54 = arith.constant 0 : index
    %c36 = arith.constant 36 : index
    %c0_55 = arith.constant 0 : index
    %46 = vector.load %arg1[%c0_54, %c36, %c0_55] : memref<1x342x4xbf16, #tpu.memory_space<vmem>>, vector<1x288x4xbf16>
    %47 = vector.shape_cast %46 : vector<1x288x4xbf16> to vector<288x4xbf16>
    %c6 = arith.constant 6 : index
    %c0_56 = arith.constant 0 : index
    %c0_57 = arith.constant 0 : index
    %48 = vector.load %arg2[%c6, %c0_56, %c0_57] : memref<9x4x128xbf16, #tpu.memory_space<vmem>>, vector<1x4x128xbf16>
    %49 = vector.shape_cast %48 : vector<1x4x128xbf16> to vector<4x128xbf16>
    %cst_58 = arith.constant dense<0.000000e+00> : vector<288x128xf32>
    %50 = tpu.matmul %47, %49, %cst_58 {dimension_numbers = #tpu.dot_dimension_numbers<[1], [0], [0], [1], [0, 0, 1, 1], [], []>} : vector<288x4xbf16>, vector<4x128xbf16>, vector<288x128xf32> -> vector<288x128xf32>
    %c0_59 = arith.constant 0 : index
    %c0_60 = arith.constant 0 : index
    %51 = vector.load %arg5[%c0_59, %c0_60] : memref<288x128xf32, #tpu.memory_space<vmem>>, vector<288x128xf32>
    %52 = arith.addf %51, %50 : vector<288x128xf32>
    %c0_61 = arith.constant 0 : index
    %c0_62 = arith.constant 0 : index
    %53 = vector.load %arg5[%c0_61, %c0_62] : memref<288x128xf32, #tpu.memory_space<vmem>>, vector<288x128xf32>
    tpu.vector_store %arg5[%c0_61, %c0_62], %52 {strides = array<i32>} : memref<288x128xf32, #tpu.memory_space<vmem>>, vector<288x128xf32>,
    %c0_63 = arith.constant 0 : index
    %c37 = arith.constant 37 : index
    %c0_64 = arith.constant 0 : index
    %54 = vector.load %arg1[%c0_63, %c37, %c0_64] : memref<1x342x4xbf16, #tpu.memory_space<vmem>>, vector<1x288x4xbf16>
    %55 = vector.shape_cast %54 : vector<1x288x4xbf16> to vector<288x4xbf16>
    %c7 = arith.constant 7 : index
    %c0_65 = arith.constant 0 : index
    %c0_66 = arith.constant 0 : index
    %56 = vector.load %arg2[%c7, %c0_65, %c0_66] : memref<9x4x128xbf16, #tpu.memory_space<vmem>>, vector<1x4x128xbf16>
    %57 = vector.shape_cast %56 : vector<1x4x128xbf16> to vector<4x128xbf16>
    %cst_67 = arith.constant dense<0.000000e+00> : vector<288x128xf32>
    %58 = tpu.matmul %55, %57, %cst_67 {dimension_numbers = #tpu.dot_dimension_numbers<[1], [0], [0], [1], [0, 0, 1, 1], [], []>} : vector<288x4xbf16>, vector<4x128xbf16>, vector<288x128xf32> -> vector<288x128xf32>
    %c0_68 = arith.constant 0 : index
    %c0_69 = arith.constant 0 : index
    %59 = vector.load %arg5[%c0_68, %c0_69] : memref<288x128xf32, #tpu.memory_space<vmem>>, vector<288x128xf32>
    %60 = arith.addf %59, %58 : vector<288x128xf32>
    %c0_70 = arith.constant 0 : index
    %c0_71 = arith.constant 0 : index
    %61 = vector.load %arg5[%c0_70, %c0_71] : memref<288x128xf32, #tpu.memory_space<vmem>>, vector<288x128xf32>
    tpu.vector_store %arg5[%c0_70, %c0_71], %60 {strides = array<i32>} : memref<288x128xf32, #tpu.memory_space<vmem>>, vector<288x128xf32>,
    %c0_72 = arith.constant 0 : index
    %c38 = arith.constant 38 : index
    %c0_73 = arith.constant 0 : index
    %62 = vector.load %arg1[%c0_72, %c38, %c0_73] : memref<1x342x4xbf16, #tpu.memory_space<vmem>>, vector<1x288x4xbf16>
    %63 = vector.shape_cast %62 : vector<1x288x4xbf16> to vector<288x4xbf16>
    %c8 = arith.constant 8 : index
    %c0_74 = arith.constant 0 : index
    %c0_75 = arith.constant 0 : index
    %64 = vector.load %arg2[%c8, %c0_74, %c0_75] : memref<9x4x128xbf16, #tpu.memory_space<vmem>>, vector<1x4x128xbf16>
    %65 = vector.shape_cast %64 : vector<1x4x128xbf16> to vector<4x128xbf16>
    %cst_76 = arith.constant dense<0.000000e+00> : vector<288x128xf32>
    %66 = tpu.matmul %63, %65, %cst_76 {dimension_numbers = #tpu.dot_dimension_numbers<[1], [0], [0], [1], [0, 0, 1, 1], [], []>} : vector<288x4xbf16>, vector<4x128xbf16>, vector<288x128xf32> -> vector<288x128xf32>
    %c0_77 = arith.constant 0 : index
    %c0_78 = arith.constant 0 : index
    %67 = vector.load %arg5[%c0_77, %c0_78] : memref<288x128xf32, #tpu.memory_space<vmem>>, vector<288x128xf32>
    %68 = arith.addf %67, %66 : vector<288x128xf32>
    %c0_79 = arith.constant 0 : index
    %c0_80 = arith.constant 0 : index
    %69 = vector.load %arg5[%c0_79, %c0_80] : memref<288x128xf32, #tpu.memory_space<vmem>>, vector<288x128xf32>
    tpu.vector_store %arg5[%c0_79, %c0_80], %68 {strides = array<i32>} : memref<288x128xf32, #tpu.memory_space<vmem>>, vector<288x128xf32>,
    %c0_81 = arith.constant 0 : index
    %c0_82 = arith.constant 0 : index
    %70 = vector.load %arg5[%c0_81, %c0_82] : memref<288x128xf32, #tpu.memory_space<vmem>>, vector<288x128xf32>
    %c0_83 = arith.constant 0 : index
    %c0_84 = arith.constant 0 : index
    %71 = vector.load %arg3[%c0_83, %c0_84] : memref<1x128xf32, #tpu.memory_space<vmem>>, vector<1x128xf32>
    %72 = vector.broadcast %71 : vector<1x128xf32> to vector<288x128xf32>
    %73 = arith.addf %70, %72 : vector<288x128xf32>
    %cst_85 = arith.constant 0.000000e+00 : f32
    %74 = vector.broadcast %cst_85 : f32 to vector<288x128xf32>
    %75 = arith.maximumf %73, %74 : vector<288x128xf32>
    %c0_86 = arith.constant 0 : index
    %c0_87 = arith.constant 0 : index
    %c0_88 = arith.constant 0 : index
    %76 = vector.load %arg4[%c0_86, %c0_87, %c0_88] : memref<1x288x128xf32, #tpu.memory_space<vmem>>, vector<1x288x128xf32>
    %77 = vector.shape_cast %76 : vector<1x288x128xf32> to vector<288x128xf32>
    %78 = vector.shape_cast %75 : vector<288x128xf32> to vector<1x288x128xf32>
    tpu.vector_store %arg4[%c0_86, %c0_87, %c0_88], %78 {strides = array<i32>} : memref<1x288x128xf32, #tpu.memory_space<vmem>>, vector<1x288x128xf32>,
    return
  }
  func.func @transform_0(%arg0: i32) -> (i32, i32, i32) {
    %c0_i32 = arith.constant 0 : i32
    %c0_i32_0 = arith.constant 0 : i32
    %c0_i32_1 = arith.constant 0 : i32
    return %arg0, %c0_i32, %c0_i32_0 : i32, i32, i32
  }
  func.func @transform_1(%arg0: i32) -> (i32, i32, i32) {
    %c0_i32 = arith.constant 0 : i32
    %c0_i32_0 = arith.constant 0 : i32
    %c0_i32_1 = arith.constant 0 : i32
    %c0_i32_2 = arith.constant 0 : i32
    return %c0_i32, %c0_i32_0, %c0_i32_1 : i32, i32, i32
  }
  func.func @transform_2(%arg0: i32) -> (i32, i32) {
    %c0_i32 = arith.constant 0 : i32
    %c0_i32_0 = arith.constant 0 : i32
    %c0_i32_1 = arith.constant 0 : i32
    return %c0_i32, %c0_i32_0 : i32, i32
  }
  func.func @transform_3(%arg0: i32) -> (i32, i32, i32) {
    %c0_i32 = arith.constant 0 : i32
    %c0_i32_0 = arith.constant 0 : i32
    %c0_i32_1 = arith.constant 0 : i32
    return %arg0, %c0_i32, %c0_i32_0 : i32, i32, i32
  }
}

</mosaic_0001>

<bundles_post_ra>
// kernel: conv_block_forward.1
= control target key start
LH: loop header
LB: loop body
LE: loop exit
PB: predicated region body
PF: predicated region fallthrough
CT: control target
= control target key end

     0   :  { %s6620_s12 = smov 0   ;;  %s7299_s0 = inlined_call_operand.vmem [shape: bf16[2,342,4], index: 0, kind: input, shape index: {}]   ;;  %s7300_s1 = inlined_call_operand.vmem [shape: bf16[9,4,128], index: 1, kind: input, shape index: {}]   ;;  %s7301_s2 = inlined_call_operand.vmem [shape: f32[1,128], index: 2, kind: input, shape index: {}]   ;;  %s7302_s3 = inlined_call_operand.vmem [shape: f32[2,288,128], index: 3, kind: output, shape index: {}]  }
   0x1 LB: > { %s5248_s13 = sadd.s32 4294967295, %s6598_s12   ;;  %p5252_p0 = scmp.ge.s32.totalorder %s6598_s12, 1  ;;  %s6598_s12 = sphi %s6620_s12, %s13_s12  }
   0x2   : > { %p137_p1 = scmp.lt.s32.totalorder %s6598_s12, 3 }
   0x4   : > { %p138_p2 = pnand %p5252_p0, %p137_p1 }
   0x5   : > { %v208_v0 = vld [vmem:[%s7300_s1] sm:$0x3] (!%p138_p2)  ;;  %vm354_vm0 = vcmask (!%p138_p2), 1041408   ;;  %p161_p3 = scmp.lt.s32.totalorder (!%p138_p2), %s5248_s13, 1  ;;  %v5405_v2 = vld [vmem:[%s7300_s1 + $0x8] sm:$0x3] (!%p138_p2) }
   0x6   : > { %141 = sbr.rel (%p138_p2) target bundleno = 569 (0x239), region = 32  ;;  %6401 = vmatprep.subr.msk.bf16.mxu1 (!%p138_p2), %vm354_vm0, %v208_v0  ;;  %v356_v1 = vsel (!%p138_p2), %vm354_vm0, %v208_v0, 0  ;;  %6405 = vmatprep.subr.msk.bf16.mxu0 (!%p138_p2), %vm354_vm0, %v5405_v2  ;;  %v6640_v3 = vsel (!%p138_p2), %vm354_vm0, %v5405_v2, 0  ;;  %v5443_v4 = vld [vmem:[%s7300_s1 + $0xa] sm:$0x3] (!%p138_p2)  ;;  %vm299_vm1 = vcmask (!%p138_p2), 31744  }
   0x7   : > { %5770 = vmatpush3.bf16.msra.mxu1 (!%p138_p2), %v356_v1  ;;  %v5291_v5 = vld [vmem:[%s7300_s1 + $0x2] sm:$0x3] (!%p138_p2)  ;;  %5922 = vmatpush3.bf16.msra.mxu0 (!%p138_p2), %v6640_v3  ;;  %vm2349_vm2 = vsmask.f32 (!%p138_p2), 6400  ;;  %v6661_v7 = vld [vmem:[%s7300_s1 + $0x4] sm:$0x3] (!%p138_p2) }
   0x8   : > { %6402 = vmatprep.subr.msk.bf16.mxu1 (!%p138_p2), %vm354_vm0, %v5291_v5  ;;  %6407 = vmatprep.subr.msk.bf16.mxu0 (!%p138_p2), %vm354_vm0, %v5443_v4  ;;  %v907_v9 = vsel (!%p138_p2), %vm354_vm0, %v5291_v5, 0  ;;  %v3087_v18 = vsel (!%p138_p2), %vm354_vm0, %v5443_v4, 0  ;;  %v6686_v40 = vld [vmem:[%s7300_s1 + $0xc] sm:$0x3] (!%p138_p2)  ;;  %vm2994_vm3 = vcmask (!%p138_p2), 1045504   ;;  %vm1326_vm5 = vcmask (!%p138_p2), 1046528  }
   0x9   : > { %vm703_vm4 = vsmask.f32 (!%p138_p2), 7424  ;;  %vm4017_vm6 = vsmask.f32 (!%p138_p2), 5376  ;;  %vm4662_vm7 = vcmask (!%p138_p2), 1044480  }
   0xd   : > { %s7304_s13 = smov (!%p161_p3, %s5248_s13), 1 }
   0xe   : > { %s6411_s22 = smul.u32 172, %s7304_s13 }
   0xf   : > { %s6412_s11 = smul.u32 288, %s7304_s13 }
  0x10   : > { %s6655_s25 = scalar_lea.vmem %s7299_s0, %s6411_s22 }
  0x11   : > { %v6421_v6 = vld [vmem:[%s6655_s25] sm:$0xff]   ;;  %v6422_v8 = vld [vmem:[%s6655_s25 + $0x8] sm:$0xff]   ;;  %v6424_v11 = vld [vmem:[%s6655_s25 + $0x10] sm:$0xff]   ;;  %s7215_s18 = scalar_lea.vmem %s7302_s3, %s6412_s11 }
  0x12   : > { %5771 = vmatprep.mubr.msk.bf16.mxu1 %vm299_vm1, %v6421_v6  ;;  %v6423_v10 = vld [vmem:[%s6655_s25 + $0x8] sm:$0xfe]   ;;  %v6425_v12 = vld [vmem:[%s6655_s25 + $0x10] sm:$0xff]   ;;  %v2359_v15 = vshrl.u32 %v6424_v11, 16  ;;  %v2362_v16 = vshll.u32 %v6424_v11, 16  ;;  %v6426_v17 = vld [vmem:[%s6655_s25 + $0x18] sm:$0xff]  }
  0x13   : > { %5772 = vmatmul.mubr.msk.bf16.vlgmr.msra.gmra.mrb[0].mxu1 %vm299_vm1, %v6422_v8  ;;  %v2351_v13 = vshrl.u32 %v6423_v10, 16  ;;  %v2354_v14 = vshll.u32 %v6423_v10, 16  ;;  %v2368_v23 = vshrl.u32 %v6426_v17, 16  ;;  %v2371_v24 = vshll.u32 %v6426_v17, 16  ;;  %v6427_v25 = vld [vmem:[%s6655_s25 + $0x18] sm:$0xff]   ;;  %v6428_v26 = vld [vmem:[%s6655_s25 + $0x20] sm:$0xff]  }
  0x14   : > { %5808 = vmatpush3.bf16.msra.mxu1 %v907_v9  ;;  %5775 = vmatprep.mubr.msk.bf16.mxu1 %vm299_vm1, %v6425_v12  ;;  %v2361_v21 = vrot.slane %v2359_v15, 1  ;;  %v2364_v22 = vrot.slane %v2362_v16, 2  ;;  %v2377_v31 = vshrl.u32 %v6428_v26, 16  ;;  %v2380_v32 = vshll.u32 %v6428_v26, 16  ;;  %v6429_v33 = vld [vmem:[%s6655_s25 + $0x20] sm:$0xff]   ;;  %v6430_v34 = vld [vmem:[%s6655_s25 + $0x28] sm:$0xff]  }
  0x15   : > { %6403 = vmatprep.subr.msk.bf16.mxu1 %vm354_vm0, %v6661_v7  ;;  %v2353_v19 = vrot.slane %v2351_v13, 1  ;;  %v2356_v20 = vrot.slane %v2354_v14, 2  ;;  %v2370_v29 = vrot.slane %v2368_v23, 1  ;;  %v2373_v30 = vrot.slane %v2371_v24, 2  ;;  %v6431_v42 = vld [vmem:[%s6655_s25 + $0x28] sm:$0xff]   ;;  %v6432_v43 = vld [vmem:[%s6655_s25 + $0x30] sm:$0xff]  }
  0x16   : > { %v2365_v28 = vor.u32 %v2364_v22, %v2361_v21  ;;  %v2379_v37 = vrot.slane %v2377_v31, 1  ;;  %v2382_v38 = vrot.slane %v2380_v32, 2  ;;  %v2386_v39 = vshrl.u32 %v6430_v34, 16  ;;  %v6433_v47 = vld [vmem:[%s6655_s25 + $0x30] sm:$0xff]   ;;  %v6434_v51 = vld [vmem:[%s6655_s25 + $0x38] sm:$0xff]   ;;  %v6436_v58 = vld [vmem:[%s6655_s25 + $0x40] sm:$0xff]  }
  0x17   : > { %v2357_v27 = vor.u32 %v2356_v20, %v2353_v19  ;;  %v2374_v36 = vor.u32 %v2373_v30, %v2370_v29  ;;  %v2389_v41 = vshll.u32 %v6430_v34, 16  ;;  %v2395_v49 = vshrl.u32 %v6432_v43, 16  ;;  %v6438_v1 = vld [vmem:[%s6655_s25 + $0x48] sm:$0xff]   ;;  %v6435_v4 = vld [vmem:[%s6655_s25 + $0x38] sm:$0xff]   ;;  %v6440_v8 = vld [vmem:[%s6655_s25 + $0x50] sm:$0xff]  }
  0x18   : > { %v2383_v45 = vor.u32 %v2382_v38, %v2379_v37  ;;  %v2388_v46 = vrot.slane %v2386_v39, 1  ;;  %v2398_v50 = vshll.u32 %v6432_v43, 16  ;;  %v2404_v56 = vshrl.u32 %v6434_v51, 16  ;;  %v6437_v12 = vld [vmem:[%s6655_s25 + $0x40] sm:$0xff]   ;;  %v6439_v23 = vld [vmem:[%s6655_s25 + $0x48] sm:$0xff]   ;;  %v6441_v24 = vld [vmem:[%s6655_s25 + $0x50] sm:$0xff]  }
  0x19   : > { %v2366_v35 = vsel %vm2349_vm2, %v2357_v27, %v2365_v28  ;;  %v2375_v44 = vsel %vm2349_vm2, %v2365_v28, %v2374_v36  ;;  %v2391_v48 = vrot.slane %v2389_v41, 2  ;;  %v2397_v54 = vrot.slane %v2395_v49, 1  ;;  %v6445_v29 = vld [vmem:[%s6655_s25 + $0x10] sm:$0xff]   ;;  %v6444_v34 = vld [vmem:[%s6655_s25 + $0x8] sm:$0xfc]   ;;  %v6446_v37 = vld [vmem:[%s6655_s25 + $0x60] sm:$0xff]  }
  0x1a   : > { %5923 = vmatprep.mubr.msk.bf16.mxu0 %vm299_vm1, %v2366_v35  ;;  %v2384_v52 = vsel %vm2349_vm2, %v2374_v36, %v2383_v45  ;;  %v2400_v55 = vrot.slane %v2398_v50, 2  ;;  %v2407_v57 = vshll.u32 %v6434_v51, 16  ;;  %v2406_v60 = vrot.slane %v2404_v56, 1  ;;  %v6443_v35 = vld [vmem:[%s6655_s25 + $0x58] sm:$0xff]   ;;  %v6458_v49 = vld [vmem:[%s6655_s25] sm:$0xff]   ;;  %v6451_v50 = vld [vmem:[%s6655_s25 + $0x28] sm:$0xff]  }
  0x1b   : > { %5776 = vmatmul.mubr.msk.bf16.gmra.mrb[4].mxu1 %vm299_vm1, %v6427_v25  ;;  %5924 = vmatmul.mubr.msk.bf16.vlgmr.msra.gmra.mrb[0].mxu0 %vm299_vm1, %v2375_v44  ;;  %v2392_v53 = vor.u32 %v2391_v48, %v2388_v46  ;;  %v2413_v63 = vshrl.u32 %v6436_v58, 16  ;;  %v2416_v0 = vshll.u32 %v6436_v58, 16  ;;  %v2422_v9 = vshrl.u32 %v6438_v1, 16  ;;  %v6449_v44 = vld [vmem:[%s6655_s25 + $0x20] sm:$0xff]  }
  0x1c   : > { %5779 = vmatprep.mubr.msk.bf16.mxu1 %vm299_vm1, %v6429_v33  ;;  %5960 = vmatpush3.bf16.msra.mxu0 %v3087_v18  ;;  %v2401_v59 = vor.u32 %v2400_v55, %v2397_v54  ;;  %v2409_v62 = vrot.slane %v2407_v57, 2  ;;  %v2425_v10 = vshll.u32 %v6438_v1, 16  ;;  %v2431_v14 = vshrl.u32 %v6440_v8, 16  ;;  %v6442_v18 = vld [vmem:[%s6655_s25 + $0x58] sm:$0xff]   ;;  %v6453_v55 = vld [vmem:[%s6655_s25 + $0x30] sm:$0xff]  }
  0x1d   : > { %5927 = vmatprep.mubr.msk.bf16.mxu0 %vm299_vm1, %v2384_v52  ;;  %6408 = vmatprep.subr.msk.bf16.mxu0 %vm354_vm0, %v6686_v40  ;;  %v2393_v61 = vsel %vm2349_vm2, %v2383_v45, %v2392_v53  ;;  %v2415_v5 = vrot.slane %v2413_v63, 1  ;;  %v2418_v6 = vrot.slane %v2416_v0, 2  ;;  %v2434_v15 = vshll.u32 %v6440_v8, 16  ;;  %v6448_v45 = vld [vmem:[%s6655_s25 + $0x68] sm:$0xff]   ;;  %v6455_v0 = vld [vmem:[%s6655_s25 + $0x38] sm:$0xff]   ;;  %v6461_v1 = vld [vmem:[%s6655_s25 + $0x10] sm:$0xff]  }
  0x1e   : > { %v2402_v2 = vsel %vm2349_vm2, %v2392_v53, %v2401_v59  ;;  %v2410_v11 = vor.u32 %v2409_v62, %v2406_v60  ;;  %v2424_v16 = vrot.slane %v2422_v9, 1  ;;  %v2427_v17 = vrot.slane %v2425_v10, 2  ;;  %v6459_v53 = vld [vmem:[%s6655_s25 + $0x8] sm:$0xff]  }
  0x1f   : > { %v2419_v13 = vor.u32 %v2418_v6, %v2415_v5  ;;  %v2433_v21 = vrot.slane %v2431_v14, 1  ;;  %v2436_v22 = vrot.slane %v2434_v15, 2  ;;  %v2440_v26 = vshrl.u32 %v6442_v18, 16  ;;  %v6754_v57 = vld [vmem:[%s7300_s1 + $0xe] sm:$0x3]  ;;  %v6463_v6 = vld [vmem:[%s6655_s25 + $0x18] sm:$0xff]  }
  0x20   : > { %v2411_v19 = vsel %vm2349_vm2, %v2401_v59, %v2410_v11  ;;  %v2428_v25 = vor.u32 %v2427_v17, %v2424_v16  ;;  %v2443_v27 = vshll.u32 %v6442_v18, 16  ;;  %v2995_v38 = vrot.slane %v6444_v34, 2  ;;  %v6452_v59 = vld [vmem:[%s6655_s25 + $0x78] sm:$0xff]   ;;  %v6456_v10 = vld [vmem:[%s6655_s25 + $0x88] sm:$0xff]  }
  0x21   : > { %v2420_v20 = vsel %vm2349_vm2, %v2410_v11, %v2419_v13  ;;  %v2437_v28 = vor.u32 %v2436_v22, %v2433_v21  ;;  %v2442_v31 = vrot.slane %v2440_v26, 1  ;;  %v2996_v39 = vrot.slane %v6445_v29, 2  ;;  %v6460_v18 = vld [vmem:[%s6655_s25 + $0x48] sm:$0xff]  }
  0x22   : > { %v2429_v30 = vsel %vm2349_vm2, %v2419_v13, %v2428_v25  ;;  %v2445_v32 = vrot.slane %v2443_v27, 2  ;;  %v3000_v48 = vrot.slane %v6449_v44, 2  ;;  %v3598_v52 = vsel %vm354_vm0, %v6686_v40, 0  ;;  %v6454_v40 = vld [vmem:[%s6655_s25 + $0x80] sm:$0xff]   ;;  %v6467_v27 = vld [vmem:[%s6655_s25 + $0x28] sm:$0xff]   ;;  %v6471_v44 = vld [vmem:[%s6655_s25 + $0x38] sm:$0xff]  }
  0x23   : > { %5780 = vmatmul.mubr.msk.bf16.gmra.mrb[8].mxu1 %vm299_vm1, %v6431_v42  ;;  %5928 = vmatmul.mubr.msk.bf16.gmra.mrb[4].mxu0 %vm299_vm1, %v2393_v61  ;;  %v2438_v33 = vsel %vm2349_vm2, %v2428_v25, %v2437_v28  ;;  %v6447_v42 = vld [vmem:[%s6655_s25 + $0x18] sm:$0xff]   ;;  %v2997_v43 = vsel %vm2994_vm3, %v2995_v38, %v2996_v39  ;;  %v707_v56 = vshll.u32 %v6458_v49, 16  ;;  %v3002_v58 = vrot.slane %v6451_v50, 2 }
  0x24   : > { %5783 = vmatprep.mubr.msk.bf16.mxu1 %vm299_vm1, %v6433_v47  ;;  %5931 = vmatprep.mubr.msk.bf16.mxu0 %vm299_vm1, %v2402_v2  ;;  %v6727_v36 = vor.u32 %v2445_v32, %v2442_v31  ;;  %v2998_v46 = vrot.slane %v6447_v42, 2  ;;  %v6450_v47 = vld [vmem:[%s6655_s25 + $0x70] sm:$0xff]   ;;  %v712_v60 = vshll.u32 %v6459_v53, 16  ;;  %v3004_v61 = vrot.slane %v6453_v55, 2  ;;  %v6464_v38 = vld [vmem:[%s6655_s25 + $0x58] sm:$0xff]  }
  0x25   : > { %v705_v62 = vshrl.u32 %v6458_v49, 16  ;;  %v709_v63 = vrot.slane %v707_v56, 1  ;;  %v3003_v2 = vsel %vm2994_vm3, %v3000_v48, %v3002_v58  ;;  %v720_v11 = vshll.u32 %v6461_v1, 16  ;;  %v6468_v56 = vld [vmem:[%s6655_s25 + $0x68] sm:$0xff]  }
  0x26   : > { %v2447_v41 = vsel %vm2349_vm2, %v2437_v28, %v6727_v36  ;;  %v2999_v51 = vsel %vm2994_vm3, %v2996_v39, %v2998_v46  ;;  %v3001_v54 = vsel %vm2994_vm3, %v2998_v46, %v3000_v48  ;;  %v714_v5 = vrot.slane %v712_v60, 1 }
  0x27   : > { %v3005_v8 = vsel %vm2994_vm3, %v3002_v58, %v3004_v61  ;;  %v710_v9 = vor.u32 %v709_v63, %v705_v62  ;;  %v716_v13 = vshrl.u32 %v6459_v53, 16  ;;  %v724_v16 = vshrl.u32 %v6461_v1, 16  ;;  %v6475_v1 = vld [vmem:[%s6655_s25 + $0x48] sm:$0xff]  }
  0x28   : > { %v728_v17 = vshll.u32 %v6463_v6, 16  ;;  %v1419_v28 = vsel %vm354_vm0, %v6661_v7, 0  ;;  %v3010_v29 = vrot.slane %v6460_v18, 2  ;;  %v6466_v7 = vld [vmem:[%s6655_s25 + $0x60] sm:$0xff]   ;;  %v3014_v48 = vrot.slane %v6464_v38, 2 }
  0x29   : > { %v715_v15 = vsel %vm703_vm4, %v710_v9, %v714_v5  ;;  %v718_v22 = vor.u32 %v716_v13, %v714_v5  ;;  %v3016_v49 = vrot.slane %v6466_v7, 2 }
  0x2a   : > { %v730_v26 = vrot.slane %v728_v17, 1  ;;  %v6474_v17 = vld [vmem:[%s6655_s25 + $0x80] sm:$0xff]  }
  0x2b   : > { %5784 = vmatmul.mubr.msk.bf16.gmra.mrb[12].mxu1 %vm299_vm1, %v6435_v4  ;;  %5932 = vmatmul.mubr.msk.bf16.gmra.mrb[8].mxu0 %vm299_vm1, %v2411_v19  ;;  %v6457_v4 = vld [vmem:[%s6655_s25 + $0x40] sm:$0xff]   ;;  %v722_v19 = vrot.slane %v720_v11, 1  ;;  %v3017_v62 = vsel %vm2994_vm3, %v3014_v48, %v3016_v49  ;;  %v776_v11 = vshll.u32 %v6475_v1, 16 }
  0x2c   : > { %5787 = vmatprep.mubr.msk.bf16.mxu1 %vm299_vm1, %v6437_v12  ;;  %5935 = vmatprep.mubr.msk.bf16.mxu0 %vm299_vm1, %v2420_v20  ;;  %v3006_v12 = vrot.slane %v6455_v0, 2  ;;  %v3008_v14 = vrot.slane %v6457_v4, 2  ;;  %v6465_v20 = vld [vmem:[%s6655_s25 + $0x20] sm:$0xff]  }
  0x2d   : > { %v726_v25 = vor.u32 %v724_v16, %v722_v19  ;;  %v723_v31 = vsel %vm703_vm4, %v718_v22, %v722_v19  ;;  %v6823_v22 = vld [vmem:[%s7300_s1 + $0x6] sm:$0x3] }
  0x2e   : > { %v3007_v21 = vsel %vm2994_vm3, %v3004_v61, %v3006_v12  ;;  %v3011_v42 = vsel %vm2994_vm3, %v3008_v14, %v3010_v29  ;;  %v6470_v61 = vld [vmem:[%s6655_s25 + $0x70] sm:$0xff]  }
  0x2f   : > { %v731_v34 = vsel %vm703_vm4, %v726_v25, %v730_v26 }
  0x33   : > { %5788 = vmatmul.mubr.msk.bf16.gmra.mrb[16].mxu1 %vm299_vm1, %v6439_v23  ;;  %5936 = vmatmul.mubr.msk.bf16.gmra.mrb[12].mxu0 %vm299_vm1, %v2429_v30  ;;  %v6462_v23 = vld [vmem:[%s6655_s25 + $0x50] sm:$0xff]   ;;  %v736_v30 = vshll.u32 %v6465_v20, 16 }
  0x34   : > { %5791 = vmatprep.mubr.msk.bf16.mxu1 %vm299_vm1, %v6441_v24  ;;  %5939 = vmatprep.mubr.msk.bf16.mxu0 %vm299_vm1, %v2438_v33  ;;  %v3009_v24 = vsel %vm2994_vm3, %v3006_v12, %v3008_v14  ;;  %v3012_v32 = vrot.slane %v6462_v23, 2  ;;  %v732_v33 = vshrl.u32 %v6463_v6, 16  ;;  %v3020_v6 = vrot.slane %v6470_v61, 2  ;;  %v6472_v12 = vld [vmem:[%s6655_s25 + $0x78] sm:$0xff]   ;;  %v6477_v14 = vld [vmem:[%s6655_s25 + $0x50] sm:$0xff]  }
  0x35   : > { %v738_v39 = vrot.slane %v736_v30, 1  ;;  %v784_v23 = vshll.u32 %v6477_v14, 16 }
  0x3b   : > { %5792 = vmatmul.mubr.msk.bf16.gmra.mrb[20].mxu1 %vm299_vm1, %v6443_v35  ;;  %5940 = vmatmul.mubr.msk.bf16.gmra.mrb[16].mxu0 %vm299_vm1, %v2447_v41  ;;  %v740_v35 = vshrl.u32 %v6465_v20, 16  ;;  %v6469_v41 = vld [vmem:[%s6655_s25 + $0x30] sm:$0xff]   ;;  %v778_v20 = vrot.slane %v776_v11, 1  ;;  %v6485_v11 = vld [vmem:[%s6655_s25 + $0x20] sm:$0xff]  }
  0x3c   : > { %5795 = vmatprep.mubr.msk.bf16.mxu1 %vm299_vm1, %v6446_v37  ;;  %5961 = vmatprep.mubr.msk.bf16.mxu0 %vm299_vm1, %v2997_v43  ;;  %v744_v37 = vshll.u32 %v6467_v27, 16  ;;  %v734_v43 = vor.u32 %v732_v33, %v730_v26  ;;  %v752_v50 = vshll.u32 %v6469_v41, 16  ;;  %v756_v53 = vshrl.u32 %v6469_v41, 16  ;;  %v6481_v33 = vld [vmem:[%s6655_s25 + $0x60] sm:$0xff]   ;;  %v6484_v41 = vld [vmem:[%s6655_s25 + $0x68] sm:$0xff]  }
  0x3d   : > { %v742_v46 = vor.u32 %v740_v35, %v738_v39  ;;  %v3024_v26 = vrot.slane %v6474_v17, 2  ;;  %v6492_v17 = vld [vmem:[%s6655_s25 + $0x88] sm:$0xff]  }
  0x3e   : > { %v754_v58 = vrot.slane %v752_v50, 1  ;;  %v808_v50 = vshll.u32 %v6484_v41, 16 }
  0x40   : > { %v758_v63 = vor.u32 %v756_v53, %v754_v58 }
  0x43   : > { %5796 = vmatmul.mubr.msk.bf16.gmra.mrb[24].mxu1 %vm299_vm1, %v6448_v45  ;;  %5962 = vmatmul.mubr.msk.bf16.vlgmr.msra.gmra.mrb[0].mxu0 %vm299_vm1, %v2999_v51  ;;  %v3013_v45 = vsel %vm2994_vm3, %v3010_v29, %v3012_v32  ;;  %v739_v51 = vsel %vm703_vm4, %v734_v43, %v738_v39  ;;  %v788_v29 = vshrl.u32 %v6477_v14, 16  ;;  %v800_v43 = vshll.u32 %v6481_v33, 16 }
  0x44   : > { %5799 = vmatprep.mubr.msk.bf16.mxu1 %vm299_vm1, %v6450_v47  ;;  %5998 = vmatpush3.bf16.msra.mxu0 %v3598_v52  ;;  %v746_v47 = vrot.slane %v744_v37, 1  ;;  %v748_v52 = vshrl.u32 %v6467_v27, 16  ;;  %v780_v27 = vshrl.u32 %v6475_v1, 16  ;;  %v6478_v37 = vld [vmem:[%s6655_s25 + $0x90] sm:$0xff]   ;;  %v812_v1 = vshrl.u32 %v6484_v41, 16 }
  0x45   : > { %5965 = vmatprep.mubr.msk.bf16.mxu0 %vm299_vm1, %v3001_v54  ;;  %6409 = vmatprep.subr.msk.bf16.mxu0 %vm354_vm0, %v6754_v57  ;;  %v760_v54 = vshll.u32 %v6471_v44, 16 }
  0x46   : > { %v747_v55 = vsel %vm703_vm4, %v742_v46, %v746_v47  ;;  %v750_v60 = vor.u32 %v748_v52, %v746_v47  ;;  %v782_v35 = vor.u32 %v780_v27, %v778_v20  ;;  %v6486_v52 = vld [vmem:[%s6655_s25 + $0x70] sm:$0xff]  }
  0x47   : > { %v762_v0 = vrot.slane %v760_v54, 1  ;;  %v6489_v27 = vld [vmem:[%s6655_s25 + $0x30] sm:$0xff]  }
  0x48   : > { %v755_v5 = vsel %vm703_vm4, %v750_v60, %v754_v58  ;;  %v6482_v58 = vld [vmem:[%s6655_s25 + $0x10] sm:$0xfc]   ;;  %v6488_v60 = vld [vmem:[%s6655_s25 + $0x78] sm:$0xff]  }
  0x49   : > { %v763_v9 = vsel %vm703_vm4, %v758_v63, %v762_v0 }
  0x4b   : > { %5800 = vmatmul.mubr.msk.bf16.gmra.mrb[28].mxu1 %vm299_vm1, %v6452_v59  ;;  %5966 = vmatmul.mubr.msk.bf16.gmra.mrb[4].mxu0 %vm299_vm1, %v3003_v2  ;;  %v6473_v59 = vld [vmem:[%s6655_s25 + $0x40] sm:$0xff]   ;;  %v3018_v2 = vrot.slane %v6468_v56, 2 }
  0x4c   : > { %5803 = vmatprep.mubr.msk.bf16.mxu1 %vm299_vm1, %v6454_v40  ;;  %5969 = vmatprep.mubr.msk.bf16.mxu0 %vm299_vm1, %v3005_v8  ;;  %v3015_v40 = vsel %vm2994_vm3, %v3012_v32, %v3014_v48  ;;  %v768_v4 = vshll.u32 %v6473_v59, 16  ;;  %v764_v8 = vshrl.u32 %v6471_v44, 16  ;;  %v786_v32 = vrot.slane %v784_v23, 1  ;;  %v6480_v48 = vld [vmem:[%s6655_s25 + $0x98] ss:$0 sps:$4 sm:$0x33]  }
  0x4d   : > { %v3021_v18 = vsel %vm2994_vm3, %v3018_v2, %v3020_v6  ;;  %v3030_v61 = vrot.slane %v6480_v48, 2  ;;  %v828_v23 = vshrl.u32 %v6488_v60, 16 }
  0x4e   : > { %v770_v13 = vrot.slane %v768_v4, 1  ;;  %v766_v16 = vor.u32 %v764_v8, %v762_v0  ;;  %v790_v39 = vor.u32 %v788_v29, %v786_v32  ;;  %v787_v44 = vsel %vm703_vm4, %v782_v35, %v786_v32  ;;  %v6490_v8 = vld [vmem:[%s6655_s25 + $0x80] sm:$0xff]   ;;  %v6494_v29 = vld [vmem:[%s6655_s25 + $0x90] ss:$0 sps:$4 sm:$0x11]   ;;  %v6491_v32 = vld [vmem:[%s6655_s25 + $0x38] sm:$0xff]  }
  0x4f   : > { %v3515_v41 = vrot.slane %v6491_v32, 2  ;;  %v6511_v32 = vld [vmem:[%s6655_s25 + $0x40] sm:$0xff]  }
  0x50   : > { %v771_v25 = vsel %vm703_vm4, %v766_v16, %v770_v13 }
  0x53   : > { %5804 = vmatmul.mubr.msk.bf16.gmra.mrb[32].mxu1 %vm299_vm1, %v6456_v10  ;;  %5970 = vmatmul.mubr.msk.bf16.gmra.mrb[8].mxu0 %vm299_vm1, %v3007_v21  ;;  %v772_v10 = vshrl.u32 %v6473_v59, 16  ;;  %v6479_v21 = vld [vmem:[%s6655_s25 + $0x58] sm:$0xff]  }
  0x54   : > { %5809 = vmatprep.mubr.msk.bf16.mxu1 %vm299_vm1, %v715_v15  ;;  %5973 = vmatprep.mubr.msk.bf16.mxu0 %vm299_vm1, %v3009_v24  ;;  %v3019_v15 = vsel %vm2994_vm3, %v3016_v49, %v3018_v2  ;;  %v3022_v24 = vrot.slane %v6472_v12, 2  ;;  %v792_v30 = vshll.u32 %v6479_v21, 16  ;;  %v796_v46 = vshrl.u32 %v6479_v21, 16 }
  0x55   : > { %v774_v19 = vor.u32 %v772_v10, %v770_v13  ;;  %v804_v49 = vshrl.u32 %v6481_v33, 16  ;;  %v3506_v2 = vrot.slane %v6482_v58, 2  ;;  %v6487_v13 = vld [vmem:[%s6655_s25 + $0x28] sm:$0xff]   ;;  %v4243_v33 = vsel %vm354_vm0, %v6754_v57, 0 }
  0x56   : > { %v3025_v38 = vsel %vm2994_vm3, %v3022_v24, %v3024_v26  ;;  %v794_v7 = vrot.slane %v792_v30, 1  ;;  %v3511_v21 = vrot.slane %v6487_v13, 2 }
  0x58   : > { %v795_v47 = vsel %vm703_vm4, %v790_v39, %v794_v7  ;;  %v798_v54 = vor.u32 %v796_v46, %v794_v7  ;;  %v848_v39 = vshll.u32 %v6494_v29, 16  ;;  %v3513_v7 = vrot.slane %v6489_v27, 2  ;;  %v6493_v46 = vld [vmem:[%s6655_s25 + $0x40] sm:$0xff]  }
  0x5a   : > { %v3514_v48 = vsel %vm2994_vm3, %v3511_v21, %v3513_v7 }
  0x5b   : > { %5810 = vmatmul.mubr.msk.bf16.vlgmr.msra.gmra.mrb[0].mxu1 %vm299_vm1, %v723_v31  ;;  %5974 = vmatmul.mubr.msk.bf16.gmra.mrb[12].mxu0 %vm299_vm1, %v3011_v42  ;;  %v6476_v31 = vld [vmem:[%s6655_s25 + $0x88] sm:$0xff]  }
  0x5c   : > { %5813 = vmatprep.mubr.msk.bf16.mxu1 %vm299_vm1, %v731_v34  ;;  %5846 = vmatpush3.bf16.msra.mxu1 %v1419_v28  ;;  %v779_v28 = vsel %vm703_vm4, %v774_v19, %v778_v20  ;;  %v3023_v34 = vsel %vm2994_vm3, %v3020_v6, %v3022_v24  ;;  %v3026_v42 = vrot.slane %v6476_v31, 2  ;;  %v824_v6 = vshll.u32 %v6488_v60, 16  ;;  %v6498_v60 = vld [vmem:[%s6655_s25 + $0x50] sm:$0xff]  }
  0x5d   : > { %5977 = vmatprep.mubr.msk.bf16.mxu0 %vm299_vm1, %v3013_v45  ;;  %6404 = vmatprep.subr.msk.bf16.mxu1 %vm354_vm0, %v6823_v22  ;;  %v3028_v45 = vrot.slane %v6478_v37, 2  ;;  %v3509_v19 = vrot.slane %v6485_v11, 2 }
  0x5e   : > { %v3027_v53 = vsel %vm2994_vm3, %v3024_v26, %v3026_v42  ;;  %v826_v16 = vrot.slane %v824_v6, 1  ;;  %v840_v26 = vshll.u32 %v6492_v17, 16  ;;  %v6503_v6 = vld [vmem:[%s6655_s25 + $0x20] sm:$0xff]  }
  0x5f   : > { %v3029_v56 = vsel %vm2994_vm3, %v3026_v42, %v3028_v45  ;;  %v3031_v10 = vsel %vm2994_vm3, %v3028_v45, %v3030_v61  ;;  %v844_v42 = vshrl.u32 %v6492_v17, 16  ;;  %v6496_v45 = vld [vmem:[%s6655_s25] sm:$0xfe]   ;;  %v1334_v13 = vrot.slane %v6503_v6, 1 }
  0x60   : > { %v830_v31 = vor.u32 %v828_v23, %v826_v16  ;;  %v842_v37 = vrot.slane %v840_v26, 1  ;;  %v6509_v23 = vld [vmem:[%s6655_s25 + $0x38] sm:$0xff]   ;;  %v6523_v6 = vld [vmem:[%s6655_s25 + $0x20] sm:$0xff]  }
  0x61   : > { %v1340_v29 = vrot.slane %v6509_v23, 1 }
  0x63   : > { %5814 = vmatmul.mubr.msk.bf16.gmra.mrb[4].mxu1 %vm299_vm1, %v739_v51  ;;  %5978 = vmatmul.mubr.msk.bf16.gmra.mrb[16].mxu0 %vm299_vm1, %v3015_v40  ;;  %v802_v51 = vrot.slane %v800_v43, 1  ;;  %v810_v40 = vrot.slane %v808_v50, 1  ;;  %v6497_v43 = vld [vmem:[%s6655_s25 + $0x8] sm:$0xff]   ;;  %v3516_v50 = vsel %vm2994_vm3, %v3513_v7, %v3515_v41  ;;  %v1342_v7 = vrot.slane %v6511_v32, 1 }
  0x64   : > { %5817 = vmatprep.mubr.msk.bf16.mxu1 %vm299_vm1, %v747_v55  ;;  %5981 = vmatprep.mubr.msk.bf16.mxu0 %vm299_vm1, %v3017_v62  ;;  %v6483_v55 = vld [vmem:[%s6655_s25 + $0x18] sm:$0xff]   ;;  %v816_v62 = vshll.u32 %v6486_v52, 16 }
  0x65   : > { %v806_v59 = vor.u32 %v804_v49, %v802_v51  ;;  %v803_v63 = vsel %vm703_vm4, %v798_v54, %v802_v51  ;;  %v3507_v0 = vrot.slane %v6483_v55, 2  ;;  %v814_v12 = vor.u32 %v812_v1, %v810_v40  ;;  %v6495_v51 = vld [vmem:[%s6655_s25 + $0x48] sm:$0xff]  }
  0x66   : > { %v846_v49 = vor.u32 %v844_v42, %v842_v37  ;;  %v3517_v54 = vrot.slane %v6493_v46, 2  ;;  %v3519_v58 = vrot.slane %v6495_v51, 2 }
  0x67   : > { %v811_v4 = vsel %vm703_vm4, %v806_v59, %v810_v40  ;;  %v3508_v14 = vsel %vm2994_vm3, %v3506_v2, %v3507_v0  ;;  %v3510_v30 = vsel %vm2994_vm3, %v3507_v0, %v3509_v19  ;;  %v6501_v40 = vld [vmem:[%s6655_s25 + $0x18] sm:$0xff]   ;;  %v3521_v2 = vrot.slane %v6498_v60, 2 }
  0x68   : > { %v3518_v61 = vsel %vm2994_vm3, %v3515_v41, %v3517_v54  ;;  %v3520_v0 = vsel %vm2994_vm3, %v3517_v54, %v3519_v58  ;;  %v1332_v1 = vrot.slane %v6501_v40, 1  ;;  %v6512_v41 = vld [vmem:[%s6655_s25 + $0x88] sm:$0xff]   ;;  %v6516_v54 = vld [vmem:[%s6655_s25 + $0x98] sm:$0xff]  }
  0x69   : > { %v3522_v11 = vsel %vm2994_vm3, %v3519_v58, %v3521_v2  ;;  %v3535_v46 = vrot.slane %v6512_v41, 2  ;;  %v6519_v58 = vld [vmem:[%s6655_s25 + $0x60] sm:$0xff]   ;;  %v6522_v40 = vld [vmem:[%s6655_s25 + $0x68] sm:$0xff]  }
  0x6b   : > { %5818 = vmatmul.mubr.msk.bf16.gmra.mrb[8].mxu1 %vm299_vm1, %v755_v5  ;;  %5982 = vmatmul.mubr.msk.bf16.gmra.mrb[20].mxu0 %vm299_vm1, %v3019_v15  ;;  %v820_v5 = vshrl.u32 %v6486_v52, 16  ;;  %v1327_v52 = vrot.slane %v6496_v45, 1  ;;  %v6515_v45 = vld [vmem:[%s6655_s25 + $0x50] sm:$0xff]  }
  0x6c   : > { %5821 = vmatprep.mubr.msk.bf16.mxu1 %vm299_vm1, %v763_v9  ;;  %5985 = vmatprep.mubr.msk.bf16.mxu0 %vm299_vm1, %v3021_v18  ;;  %v818_v9 = vrot.slane %v816_v62, 1  ;;  %v832_v18 = vshll.u32 %v6490_v8, 16  ;;  %v1346_v51 = vrot.slane %v6515_v45, 1 }
  0x6e   : > { %v822_v15 = vor.u32 %v820_v5, %v818_v9  ;;  %v819_v20 = vsel %vm703_vm4, %v814_v12, %v818_v9  ;;  %v6505_v9 = vld [vmem:[%s6655_s25 + $0x28] sm:$0xff]   ;;  %v6502_v12 = vld [vmem:[%s6655_s25 + $0x60] sm:$0xff]  }
  0x6f   : > { %v3525_v17 = vrot.slane %v6502_v12, 2  ;;  %v6525_v12 = vld [vmem:[%s6655_s25 + $0x28] sm:$0xff]  }
  0x70   : > { %v827_v24 = vsel %vm703_vm4, %v822_v15, %v826_v16  ;;  %v6504_v15 = vld [vmem:[%s6655_s25 + $0x68] sm:$0xff]   ;;  %v1336_v16 = vrot.slane %v6505_v9, 1 }
  0x73   : > { %5822 = vmatmul.mubr.msk.bf16.gmra.mrb[12].mxu1 %vm299_vm1, %v771_v25  ;;  %5986 = vmatmul.mubr.msk.bf16.gmra.mrb[24].mxu0 %vm299_vm1, %v3023_v34  ;;  %v836_v25 = vshrl.u32 %v6490_v8, 16  ;;  %v3512_v34 = vsel %vm2994_vm3, %v3509_v19, %v3511_v21  ;;  %v6507_v19 = vld [vmem:[%s6655_s25 + $0x30] sm:$0xff]   ;;  %v1337_v21 = vsel %vm1326_vm5, %v1334_v13, %v1336_v16 }
  0x74   : > { %5825 = vmatprep.mubr.msk.bf16.mxu1 %vm299_vm1, %v779_v28  ;;  %5989 = vmatprep.mubr.msk.bf16.mxu0 %vm299_vm1, %v3025_v38  ;;  %v834_v28 = vrot.slane %v832_v18, 1  ;;  %v6880_v38 = vld [vmem:[%s7300_s1 + $0x10] sm:$0x3]  ;;  %v1335_v18 = vsel %vm1326_vm5, %v1332_v1, %v1334_v13  ;;  %v1338_v26 = vrot.slane %v6507_v19, 1  ;;  %v4039_v19 = vshll.u32 %v6523_v6, 16 }
  0x76   : > { %v838_v35 = vor.u32 %v836_v25, %v834_v28  ;;  %v835_v57 = vsel %vm703_vm4, %v830_v31, %v834_v28  ;;  %v6506_v25 = vld [vmem:[%s6655_s25 + $0x70] sm:$0xff]   ;;  %v6508_v28 = vld [vmem:[%s6655_s25 + $0x78] sm:$0xff]   ;;  %v1339_v31 = vsel %vm1326_vm5, %v1336_v16, %v1338_v26 }
  0x7b   : > { %5826 = vmatmul.mubr.msk.bf16.gmra.mrb[16].mxu1 %vm299_vm1, %v787_v44  ;;  %5990 = vmatmul.mubr.msk.bf16.gmra.mrb[28].mxu0 %vm299_vm1, %v3027_v53  ;;  %v843_v44 = vsel %vm703_vm4, %v838_v35, %v842_v37  ;;  %v1328_v53 = vrot.slane %v6497_v43, 1  ;;  %v6513_v35 = vld [vmem:[%s6655_s25 + $0x48] sm:$0xff]  }
  0x7c   : > { %5829 = vmatprep.mubr.msk.bf16.mxu1 %vm299_vm1, %v795_v47  ;;  %5993 = vmatprep.mubr.msk.bf16.mxu0 %vm299_vm1, %v3029_v56  ;;  %v850_v47 = vrot.slane %v848_v39, 1  ;;  %v6499_v56 = vld [vmem:[%s6655_s25 + $0x10] sm:$0xff]   ;;  %v6510_v39 = vld [vmem:[%s6655_s25 + $0x80] sm:$0xff]   ;;  %v1344_v42 = vrot.slane %v6513_v35, 1 }
  0x7d   : > { %v1329_v59 = vsel %vm1326_vm5, %v1327_v52, %v1328_v53  ;;  %v1330_v62 = vrot.slane %v6499_v56, 1  ;;  %v3533_v43 = vrot.slane %v6510_v39, 2  ;;  %v6521_v52 = vld [vmem:[%s6655_s25 + $0x18] sm:$0xff]   ;;  %v6520_v56 = vld [vmem:[%s6655_s25 + $0x10] sm:$0xfc]   ;;  %v6528_v39 = vld [vmem:[%s6655_s25 + $0x80] sm:$0xff]  }
  0x7e   : > { %v851_v55 = vsel %vm703_vm4, %v846_v49, %v850_v47  ;;  %v1345_v47 = vsel %vm1326_vm5, %v1342_v7, %v1344_v42  ;;  %v6514_v49 = vld [vmem:[%s6655_s25 + $0x90] sm:$0xff]   ;;  %v1347_v60 = vsel %vm1326_vm5, %v1344_v42, %v1346_v51 }
  0x7f   : > { %v1333_v8 = vsel %vm1326_vm5, %v1330_v62, %v1332_v1 }
  0x83   : > { %5830 = vmatmul.mubr.msk.bf16.gmra.mrb[20].mxu1 %vm299_vm1, %v803_v63  ;;  %5994 = vmatmul.mubr.msk.bf16.gmra.mrb[32].mxu0 %vm299_vm1, %v3031_v10  ;;  %v6500_v63 = vld [vmem:[%s6655_s25 + $0x58] sm:$0xff]   ;;  %v1930_v10 = vsel %vm354_vm0, %v6823_v22, 0  ;;  %v6591_v22 = vld [vmem:[%s7300_s1 + $0x8] sm:$0x3] }
  0x84   : > { %5833 = vmatprep.mubr.msk.bf16.mxu1 %vm299_vm1, %v811_v4  ;;  %5999 = vmatprep.mubr.msk.bf16.mxu0 %vm299_vm1, %v3508_v14  ;;  %v1331_v4 = vsel %vm1326_vm5, %v1328_v53, %v1330_v62  ;;  %v3523_v5 = vrot.slane %v6500_v63, 2  ;;  %v3536_v53 = vsel %vm2994_vm3, %v3533_v43, %v3535_v46  ;;  %v4027_v62 = vshrl.u32 %v6521_v52, 16 }
  0x85   : > { %v4030_v63 = vshll.u32 %v6521_v52, 16 }
  0x86   : > { %v3524_v14 = vsel %vm2994_vm3, %v3521_v2, %v3523_v5  ;;  %v4019_v2 = vshrl.u32 %v6520_v56, 16  ;;  %v4029_v9 = vrot.slane %v4027_v62, 2 }
  0x8b   : > { %5834 = vmatmul.mubr.msk.bf16.gmra.mrb[24].mxu1 %vm299_vm1, %v819_v20  ;;  %6000 = vmatmul.mubr.msk.bf16.vlgmr.msra.gmra.mrb[0].mxu0 %vm299_vm1, %v3510_v30  ;;  %v3527_v20 = vrot.slane %v6504_v15, 2  ;;  %v3529_v30 = vrot.slane %v6506_v25, 2  ;;  %v4048_v25 = vshll.u32 %v6525_v12, 16 }
  0x8c   : > { %5837 = vmatprep.mubr.msk.bf16.mxu1 %vm299_vm1, %v827_v24  ;;  %6036 = vmatpush3.bf16.msra.mxu0 %v4243_v33  ;;  %v3526_v24 = vsel %vm2994_vm3, %v3523_v5, %v3525_v17  ;;  %v3531_v33 = vrot.slane %v6508_v28, 2  ;;  %v1350_v5 = vrot.slane %v6519_v58, 1  ;;  %v6527_v28 = vld [vmem:[%s6655_s25 + $0x30] sm:$0xff]  }
  0x8d   : > { %6003 = vmatprep.mubr.msk.bf16.mxu0 %vm299_vm1, %v3512_v34  ;;  %6410 = vmatprep.subr.msk.bf16.mxu0 %vm354_vm0, %v6880_v38  ;;  %v3528_v27 = vsel %vm2994_vm3, %v3525_v17, %v3527_v20  ;;  %v1341_v34 = vsel %vm1326_vm5, %v1338_v26, %v1340_v29  ;;  %v3530_v37 = vsel %vm2994_vm3, %v3527_v20, %v3529_v30  ;;  %v6524_v17 = vld [vmem:[%s6655_s25 + $0x70] sm:$0xff]   ;;  %v4045_v20 = vshrl.u32 %v6525_v12, 16  ;;  %v6526_v26 = vld [vmem:[%s6655_s25 + $0x78] sm:$0xff]  }
  0x8e   : > { %v4050_v35 = vrot.slane %v4048_v25, 3  ;;  %v6536_v12 = vld [vmem:[%s6655_s25 + $0x50] sm:$0xff]  }
  0x8f   : > { %v4047_v32 = vrot.slane %v4045_v20, 2  ;;  %v4093_v20 = vshll.u32 %v6536_v12, 16 }
  0x91   : > { %v4051_v45 = vor.u32 %v4050_v35, %v4047_v32  ;;  %v6540_v32 = vld [vmem:[%s6655_s25 + $0x60] sm:$0xff]  }
  0x93   : > { %5838 = vmatmul.mubr.msk.bf16.gmra.mrb[28].mxu1 %vm299_vm1, %v835_v57  ;;  %6004 = vmatmul.mubr.msk.bf16.gmra.mrb[4].mxu0 %vm299_vm1, %v3514_v48  ;;  %v3532_v57 = vsel %vm2994_vm3, %v3529_v30, %v3531_v33  ;;  %v6517_v48 = vld [vmem:[%s6655_s25 + $0x58] sm:$0xff]  }
  0x94   : > { %5841 = vmatprep.mubr.msk.bf16.mxu1 %vm299_vm1, %v843_v44  ;;  %6007 = vmatprep.mubr.msk.bf16.mxu0 %vm299_vm1, %v3516_v50  ;;  %v1343_v44 = vsel %vm1326_vm5, %v1340_v29, %v1342_v7  ;;  %v3534_v50 = vsel %vm2994_vm3, %v3531_v33, %v3533_v43  ;;  %v6529_v33 = vld [vmem:[%s6655_s25 + $0x38] sm:$0xff]   ;;  %v4054_v7 = vshrl.u32 %v6527_v28, 16 }
  0x95   : > { %v4063_v43 = vshrl.u32 %v6529_v33, 16 }
  0x9b   : > { %5842 = vmatmul.mubr.msk.bf16.gmra.mrb[32].mxu1 %vm299_vm1, %v851_v55  ;;  %6008 = vmatmul.mubr.msk.bf16.gmra.mrb[8].mxu0 %vm299_vm1, %v3518_v61  ;;  %v1348_v55 = vrot.slane %v6517_v48, 1  ;;  %v6518_v61 = vld [vmem:[%s6655_s25 + $0xa0] ss:$0 sps:$4 sm:$0x33]   ;;  %v4056_v48 = vrot.slane %v4054_v7, 2 }
  0x9c   : > { %5847 = vmatprep.mubr.msk.bf16.mxu1 %vm299_vm1, %v1329_v59  ;;  %6011 = vmatprep.mubr.msk.bf16.mxu0 %vm299_vm1, %v3520_v0  ;;  %v3537_v59 = vrot.slane %v6514_v49, 2  ;;  %v3539_v0 = vrot.slane %v6516_v54, 2  ;;  %v3541_v16 = vrot.slane %v6518_v61, 2 }
  0x9d   : > { %v1349_v1 = vsel %vm1326_vm5, %v1346_v51, %v1348_v55  ;;  %v6531_v51 = vld [vmem:[%s6655_s25 + $0x40] sm:$0xff]  }
  0x9e   : > { %v3540_v13 = vsel %vm2994_vm3, %v3537_v59, %v3539_v0  ;;  %v3542_v29 = vsel %vm2994_vm3, %v3539_v0, %v3541_v16  ;;  %v4072_v62 = vshrl.u32 %v6531_v51, 16  ;;  %v6532_v0 = vld [vmem:[%s6655_s25 + $0x90] ss:$0 sps:$4 sm:$0x11]  }
  0xa3   : > { %5848 = vmatmul.mubr.msk.bf16.vlgmr.msra.gmra.mrb[0].mxu1 %vm299_vm1, %v1331_v4  ;;  %6012 = vmatmul.mubr.msk.bf16.gmra.mrb[12].mxu0 %vm299_vm1, %v3522_v11  ;;  %v4022_v4 = vshll.u32 %v6520_v56, 16  ;;  %v1352_v11 = vrot.slane %v6522_v40, 1 }
  0xa4   : > { %5851 = vmatprep.mubr.msk.bf16.mxu1 %vm299_vm1, %v1333_v8  ;;  %5884 = vmatpush3.bf16.msra.mxu1 %v1930_v10  ;;  %v3538_v8 = vsel %vm2994_vm3, %v3535_v46, %v3537_v59  ;;  %v4032_v10 = vrot.slane %v4030_v63, 3  ;;  %v6533_v59 = vld [vmem:[%s6655_s25 + $0x48] sm:$0xff]   ;;  %v4075_v63 = vshll.u32 %v6531_v51, 16 }
  0xa5   : > { %6406 = vmatprep.subr.msk.bf16.mxu1 %vm354_vm0, %v6591_v22  ;;  %6015 = vmatprep.mubr.msk.bf16.mxu0 %vm299_vm1, %v3524_v14  ;;  %v4021_v14 = vrot.slane %v4019_v2, 2  ;;  %v4024_v15 = vrot.slane %v4022_v4, 3  ;;  %v4036_v22 = vshrl.u32 %v6523_v6, 16  ;;  %v4084_v2 = vshll.u32 %v6533_v59, 16  ;;  %v6534_v4 = vld [vmem:[%s6655_s25 + $0x8] sm:$0xfe]  }
  0xa6   : > { %v4033_v23 = vor.u32 %v4032_v10, %v4029_v9  ;;  %v4074_v9 = vrot.slane %v4072_v62, 2  ;;  %v4077_v10 = vrot.slane %v4075_v63, 3  ;;  %v6545_v63 = vld [vmem:[%s6655_s25 + $0x38] sm:$0xff]  }
  0xa7   : > { %v4038_v30 = vrot.slane %v4036_v22, 2  ;;  %v6538_v22 = vld [vmem:[%s6655_s25 + $0x58] sm:$0xff]  }
  0xa8   : > { %v4099_v25 = vshrl.u32 %v6538_v22, 16 }
  0xab   : > { %5852 = vmatmul.mubr.msk.bf16.gmra.mrb[4].mxu1 %vm299_vm1, %v1335_v18  ;;  %6016 = vmatmul.mubr.msk.bf16.gmra.mrb[16].mxu0 %vm299_vm1, %v3526_v24  ;;  %v1351_v18 = vsel %vm1326_vm5, %v1348_v55, %v1350_v5  ;;  %v1353_v24 = vsel %vm1326_vm5, %v1350_v5, %v1352_v11  ;;  %v4755_v55 = vsel %vm354_vm0, %v6880_v38, 0  ;;  %v6535_v5 = vld [vmem:[%s6655_s25 + $0x10] sm:$0xff]  }
  0xac   : > { %5855 = vmatprep.mubr.msk.bf16.mxu1 %vm299_vm1, %v1337_v21  ;;  %6019 = vmatprep.mubr.msk.bf16.mxu0 %vm299_vm1, %v3528_v27  ;;  %v4025_v21 = vor.u32 %v4024_v15, %v4021_v14  ;;  %v1354_v27 = vrot.slane %v6524_v17, 1  ;;  %v4086_v14 = vrot.slane %v4084_v2, 3  ;;  %v1838_v15 = vrot.slane %v6534_v4, 1  ;;  %v6547_v2 = vld [vmem:[%s6655_s25 + $0x40] sm:$0xff]  }
  0xad   : > { %v1839_v16 = vrot.slane %v6535_v5, 1  ;;  %v4078_v17 = vor.u32 %v4077_v10, %v4074_v9  ;;  %v6548_v9 = vld [vmem:[%s6655_s25 + $0x80] sm:$0xff]  }
  0xae   : > { %v1355_v42 = vsel %vm1326_vm5, %v1352_v11, %v1354_v27  ;;  %v1362_v11 = vrot.slane %v6532_v0, 1 }
  0xb3   : > { %5856 = vmatmul.mubr.msk.bf16.gmra.mrb[8].mxu1 %vm299_vm1, %v1339_v31  ;;  %6020 = vmatmul.mubr.msk.bf16.gmra.mrb[20].mxu0 %vm299_vm1, %v3530_v37  ;;  %v4041_v31 = vrot.slane %v4039_v19, 3  ;;  %v1356_v37 = vrot.slane %v6526_v26, 1  ;;  %v4090_v19 = vshrl.u32 %v6536_v12, 16  ;;  %v4102_v26 = vshll.u32 %v6538_v22, 16 }
  0xb4   : > { %5859 = vmatprep.mubr.msk.bf16.mxu1 %vm299_vm1, %v1341_v34  ;;  %6023 = vmatprep.mubr.msk.bf16.mxu0 %vm299_vm1, %v3532_v57  ;;  %v4034_v34 = vsel %vm4017_vm6, %v4025_v21, %v4033_v23  ;;  %v4057_v57 = vshll.u32 %v6527_v28, 16  ;;  %v6537_v21 = vld [vmem:[%s6655_s25 + $0x18] sm:$0xff]   ;;  %v4144_v22 = vshrl.u32 %v6548_v9, 16 }
  0xb5   : > { %v4042_v41 = vor.u32 %v4041_v31, %v4038_v30  ;;  %v1357_v46 = vsel %vm1326_vm5, %v1354_v27, %v1356_v37  ;;  %v6539_v27 = vld [vmem:[%s6655_s25 + $0x20] sm:$0xff]   ;;  %v4095_v30 = vrot.slane %v4093_v20, 3  ;;  %v1841_v31 = vrot.slane %v6537_v21, 1 }
  0xb6   : > { %v4059_v49 = vrot.slane %v4057_v57, 3  ;;  %v4104_v35 = vrot.slane %v4102_v26, 3  ;;  %v4146_v26 = vrot.slane %v4144_v22, 2 }
  0xb7   : > { %v4043_v52 = vsel %vm4017_vm6, %v4033_v23, %v4042_v41  ;;  %v4052_v56 = vsel %vm4017_vm6, %v4042_v41, %v4051_v45  ;;  %v1842_v57 = vsel %vm1326_vm5, %v1839_v16, %v1841_v31  ;;  %v4108_v41 = vshrl.u32 %v6540_v32, 16 }
  0xb8   : > { %v4060_v40 = vor.u32 %v4059_v49, %v4056_v48  ;;  %v6543_v48 = vld [vmem:[%s6655_s25 + $0x30] sm:$0xff]  }
  0xba   : > { %v4061_v6 = vsel %vm4017_vm6, %v4051_v45, %v4060_v40 }
  0xbb   : > { %5860 = vmatmul.mubr.msk.bf16.gmra.mrb[12].mxu1 %vm299_vm1, %v1343_v44  ;;  %6024 = vmatmul.mubr.msk.bf16.gmra.mrb[24].mxu0 %vm299_vm1, %v3534_v50  ;;  %v4066_v44 = vshll.u32 %v6529_v33, 16  ;;  %v1358_v50 = vrot.slane %v6528_v39, 1  ;;  %v6542_v39 = vld [vmem:[%s6655_s25 + $0x68] sm:$0xff]  }
  0xbc   : > { %5863 = vmatprep.mubr.msk.bf16.mxu1 %vm299_vm1, %v1345_v47  ;;  %6027 = vmatprep.mubr.msk.bf16.mxu0 %vm299_vm1, %v3536_v53  ;;  %v6530_v47 = vld [vmem:[%s6655_s25 + $0x88] sm:$0xff]   ;;  %v4065_v53 = vrot.slane %v4063_v43, 2 }
  0xbd   : > { %v4068_v54 = vrot.slane %v4066_v44, 3  ;;  %v1360_v58 = vrot.slane %v6530_v47, 1  ;;  %v6541_v43 = vld [vmem:[%s6655_s25 + $0x28] sm:$0xff]   ;;  %v4120_v47 = vshll.u32 %v6542_v39, 16 }
  0xbf   : > { %v4069_v61 = vor.u32 %v4068_v54, %v4065_v53  ;;  %v1361_v38 = vsel %vm1326_vm5, %v1358_v50, %v1360_v58  ;;  %v6544_v53 = vld [vmem:[%s6655_s25 + $0x70] sm:$0xff]  }
  0xc0   : > { %v4129_v62 = vshll.u32 %v6544_v53, 16 }
  0xc1   : > { %v4079_v28 = vsel %vm4017_vm6, %v4069_v61, %v4078_v17 }
  0xc3   : > { %5864 = vmatmul.mubr.msk.bf16.gmra.mrb[16].mxu1 %vm299_vm1, %v1347_v60  ;;  %6028 = vmatmul.mubr.msk.bf16.gmra.mrb[28].mxu0 %vm299_vm1, %v3538_v8  ;;  %v1359_v60 = vsel %vm1326_vm5, %v1356_v37, %v1358_v50  ;;  %v4070_v8 = vsel %vm4017_vm6, %v4060_v40, %v4069_v61  ;;  %v1843_v37 = vrot.slane %v6539_v27, 1  ;;  %v4110_v50 = vrot.slane %v4108_v41, 2 }
  0xc4   : > { %5867 = vmatprep.mubr.msk.bf16.mxu1 %vm299_vm1, %v1349_v1  ;;  %6031 = vmatprep.mubr.msk.bf16.mxu0 %vm299_vm1, %v3540_v13  ;;  %v4081_v1 = vshrl.u32 %v6533_v59, 16  ;;  %v6546_v59 = vld [vmem:[%s6655_s25 + $0x78] sm:$0xff]   ;;  %v4126_v61 = vshrl.u32 %v6544_v53, 16 }
  0xc5   : > { %v1844_v45 = vsel %vm1326_vm5, %v1841_v31, %v1843_v37 }
  0xc6   : > { %v4083_v13 = vrot.slane %v4081_v1, 2  ;;  %v4138_v1 = vshll.u32 %v6546_v59, 16  ;;  %v4128_v5 = vrot.slane %v4126_v61, 2 }
  0xc8   : > { %v4087_v23 = vor.u32 %v4086_v14, %v4083_v13  ;;  %v4140_v12 = vrot.slane %v4138_v1, 3  ;;  %v1851_v13 = vrot.slane %v6547_v2, 1  ;;  %v6550_v14 = vld [vmem:[%s6655_s25 + $0x88] sm:$0xff]   ;;  %v6558_v2 = vld [vmem:[%s6655_s25 + $0x10] sm:$0xf8]  }
  0xc9   : > { %v4153_v21 = vshrl.u32 %v6550_v14, 16 }
  0xca   : > { %v4088_v33 = vsel %vm4017_vm6, %v4078_v17, %v4087_v23  ;;  %v4147_v17 = vshll.u32 %v6548_v9, 16  ;;  %v6562_v9 = vld [vmem:[%s6655_s25 + $0x78] sm:$0xff]  }
  0xcb   : > { %5868 = vmatmul.mubr.msk.bf16.gmra.mrb[20].mxu1 %vm299_vm1, %v1351_v18  ;;  %6032 = vmatmul.mubr.msk.bf16.gmra.mrb[32].mxu0 %vm299_vm1, %v3542_v29  ;;  %v1363_v18 = vsel %vm1326_vm5, %v1360_v58, %v1362_v11  ;;  %v4092_v29 = vrot.slane %v4090_v19, 2  ;;  %v1847_v58 = vrot.slane %v6543_v48, 1  ;;  %v4155_v31 = vrot.slane %v4153_v21, 2  ;;  %v6566_v21 = vld [vmem:[%s6655_s25 + $0x88] sm:$0xff]  }
  0xcc   : > { %5871 = vmatprep.mubr.msk.bf16.mxu1 %vm299_vm1, %v1353_v24  ;;  %6037 = vmatprep.mubr.msk.bf16.mxu0 %vm299_vm1, %v4034_v34  ;;  %v1840_v24 = vsel %vm1326_vm5, %v1838_v15, %v1839_v16  ;;  %v4101_v34 = vrot.slane %v4099_v25, 2  ;;  %v4149_v27 = vrot.slane %v4147_v17, 3  ;;  %v6563_v17 = vld [vmem:[%s6655_s25 + $0x28] sm:$0xff]  }
  0xcd   : > { %v4096_v7 = vor.u32 %v4095_v30, %v4092_v29  ;;  %v6552_v29 = vld [vmem:[%s6655_s25 + $0x90] sm:$0xff]  }
  0xce   : > { %v4105_v44 = vor.u32 %v4104_v35, %v4101_v34  ;;  %v6554_v34 = vld [vmem:[%s6655_s25 + $0x98] sm:$0xff]   ;;  %v4150_v35 = vor.u32 %v4149_v27, %v4146_v26  ;;  %v6572_v26 = vld [vmem:[%s6655_s25 + $0x60] sm:$0xff]  }
  0xcf   : > { %v4097_v49 = vsel %vm4017_vm6, %v4087_v23, %v4096_v7  ;;  %v4156_v23 = vshll.u32 %v6550_v14, 16 }
  0xd0   : > { %v4106_v54 = vsel %vm4017_vm6, %v4096_v7, %v4105_v44  ;;  %v4165_v7 = vshll.u32 %v6552_v29, 16 }
  0xd2   : > { %v4167_v48 = vrot.slane %v4165_v7, 3  ;;  %v6574_v7 = vld [vmem:[%s6655_s25 + $0x68] sm:$0xff]  }
  0xd3   : > { %5872 = vmatmul.mubr.msk.bf16.gmra.mrb[24].mxu1 %vm299_vm1, %v1355_v42  ;;  %6038 = vmatmul.mubr.msk.bf16.vlgmr.msra.gmra.mrb[0].mxu0 %vm299_vm1, %v4043_v52  ;;  %v4111_v42 = vshll.u32 %v6540_v32, 16  ;;  %v1845_v52 = vrot.slane %v6541_v43, 1  ;;  %v4158_v32 = vrot.slane %v4156_v23, 3  ;;  %v4171_v43 = vshrl.u32 %v6554_v34, 16 }
  0xd4   : > { %5875 = vmatprep.mubr.msk.bf16.mxu1 %vm299_vm1, %v1357_v46  ;;  %6074 = vmatpush3.bf16.msra.mxu0 %v4755_v55  ;;  %v4117_v46 = vshrl.u32 %v6542_v39, 16  ;;  %v4162_v39 = vshrl.u32 %v6552_v29, 16  ;;  %v4668_v23 = vrot.slane %v6563_v17, 3  ;;  %v1869_v29 = vrot.slane %v6566_v21, 1 }
  0xd5   : > { %6041 = vmatprep.mubr.msk.bf16.mxu0 %vm299_vm1, %v4052_v56  ;;  %v4113_v51 = vrot.slane %v4111_v42, 3  ;;  %v4122_v56 = vrot.slane %v4120_v47, 3  ;;  %v1848_v0 = vsel %vm1326_vm5, %v1845_v52, %v1847_v58  ;;  %v4159_v41 = vor.u32 %v4158_v32, %v4155_v31  ;;  %v6567_v31 = vld [vmem:[%s6655_s25 + $0x38] sm:$0xff]  }
  0xd6   : > { %v4119_v55 = vrot.slane %v4117_v46, 2  ;;  %v4164_v47 = vrot.slane %v4162_v39, 2  ;;  %v6570_v39 = vld [vmem:[%s6655_s25 + $0x98] ss:$0 sps:$4 sm:$0x11]  }
  0xd7   : > { %v4114_v40 = vor.u32 %v4113_v51, %v4110_v50  ;;  %v6556_v50 = vld [vmem:[%s6655_s25 + $0xa0] ss:$0 sps:$4 sm:$0x77]   ;;  %v4160_v51 = vsel %vm4017_vm6, %v4150_v35, %v4159_v41 }
  0xd9   : > { %v4115_v4 = vsel %vm4017_vm6, %v4105_v44, %v4114_v40  ;;  %v4174_v44 = vshll.u32 %v6554_v34, 16  ;;  %v2452_v34 = vshll.u32 %v6572_v26, 16 }
  0xdb   : > { %5876 = vmatmul.mubr.msk.bf16.gmra.mrb[28].mxu1 %vm299_vm1, %v1359_v60  ;;  %6042 = vmatmul.mubr.msk.bf16.gmra.mrb[4].mxu0 %vm299_vm1, %v4061_v6  ;;  %v1846_v60 = vsel %vm1326_vm5, %v1843_v37, %v1845_v52  ;;  %v4131_v6 = vrot.slane %v4129_v62, 3  ;;  %v4173_v52 = vrot.slane %v4171_v43, 2  ;;  %v4176_v53 = vrot.slane %v4174_v44, 3  ;;  %v6560_v62 = vld [vmem:[%s6655_s25 + $0x70] sm:$0xff]  }
  0xdc   : > { %5879 = vmatprep.mubr.msk.bf16.mxu1 %vm299_vm1, %v1361_v38  ;;  %6045 = vmatprep.mubr.msk.bf16.mxu0 %vm299_vm1, %v4070_v8  ;;  %v4135_v38 = vshrl.u32 %v6546_v59, 16  ;;  %v1849_v8 = vrot.slane %v6545_v63, 1  ;;  %v4183_v59 = vshll.u32 %v6556_v50, 16  ;;  %v2454_v43 = vrot.slane %v2452_v34, 2  ;;  %v6576_v44 = vld [vmem:[%s6655_s25 + $0x70] sm:$0xff]  }
  0xdd   : > { %v4132_v15 = vor.u32 %v4131_v6, %v4128_v5  ;;  %v1863_v5 = vrot.slane %v6560_v62, 1  ;;  %v6586_v34 = vld [vmem:[%s6655_s25 + $0x98] ss:$0 sps:$4 sm:$0x33]  }
  0xde   : > { %v4137_v11 = vrot.slane %v4135_v38, 2  ;;  %v1850_v16 = vsel %vm1326_vm5, %v1847_v58, %v1849_v8  ;;  %v1852_v20 = vsel %vm1326_vm5, %v1849_v8, %v1851_v13  ;;  %v4180_v58 = vshrl.u32 %v6556_v50, 16 }
  0xe0   : > { %v4141_v19 = vor.u32 %v4140_v12, %v4137_v11 }
  0xe2   : > { %v4142_v30 = vsel %vm4017_vm6, %v4132_v15, %v4141_v19  ;;  %v4151_v46 = vsel %vm4017_vm6, %v4141_v19, %v4150_v35 }
  0xe3   : > { %5880 = vmatmul.mubr.msk.bf16.gmra.mrb[32].mxu1 %vm299_vm1, %v1363_v18  ;;  %6046 = vmatmul.mubr.msk.bf16.gmra.mrb[8].mxu0 %vm299_vm1, %v4079_v28  ;;  %v6549_v18 = vld [vmem:[%s6655_s25 + $0x48] sm:$0xff]  }
  0xe4   : > { %5885 = vmatprep.mubr.msk.bf16.mxu1 %vm299_vm1, %v1840_v24  ;;  %6049 = vmatprep.mubr.msk.bf16.mxu0 %vm299_vm1, %v4088_v33  ;;  %v6551_v24 = vld [vmem:[%s6655_s25 + $0x50] sm:$0xff]   ;;  %v1853_v28 = vrot.slane %v6549_v18, 1 }
  0xe5   : > { %v1855_v33 = vrot.slane %v6551_v24, 1 }
  0xe6   : > { %v1854_v37 = vsel %vm1326_vm5, %v1851_v13, %v1853_v28  ;;  %v6564_v13 = vld [vmem:[%s6655_s25 + $0x80] sm:$0xff]  }
  0xe7   : > { %v1856_v42 = vsel %vm1326_vm5, %v1853_v28, %v1855_v33  ;;  %v1867_v18 = vrot.slane %v6564_v13, 1  ;;  %v6565_v28 = vld [vmem:[%s6655_s25 + $0x30] sm:$0xff]  }
  0xe8   : > { %v4670_v35 = vrot.slane %v6565_v28, 3 }
  0xeb   : > { %5886 = vmatmul.mubr.msk.bf16.vlgmr.msra.gmra.mrb[0].mxu1 %vm299_vm1, %v1842_v57  ;;  %6050 = vmatmul.mubr.msk.bf16.gmra.mrb[12].mxu0 %vm299_vm1, %v4097_v49  ;;  %v6553_v57 = vld [vmem:[%s6655_s25 + $0x58] sm:$0xff]  }
  0xec   : > { %5889 = vmatprep.mubr.msk.bf16.mxu1 %vm299_vm1, %v1844_v45  ;;  %6112 = vmatpush3.bf16.msra.mxu1 %v6640_v3  ;;  %v4123_v3 = vor.u32 %v4122_v56, %v4119_v55  ;;  %v6555_v45 = vld [vmem:[%s6655_s25 + $0x60] sm:$0xff]   ;;  %v1857_v49 = vrot.slane %v6553_v57, 1  ;;  %v4168_v55 = vor.u32 %v4167_v48, %v4164_v47  ;;  %v4672_v57 = vrot.slane %v6567_v31, 3 }
  0xed   : > { %6053 = vmatprep.mubr.msk.bf16.mxu0 %vm299_vm1, %v4106_v54  ;;  %v1859_v54 = vrot.slane %v6555_v45, 1  ;;  %v4671_v45 = vsel %vm4662_vm7, %v4668_v23, %v4670_v35  ;;  %v1873_v47 = vrot.slane %v6570_v39, 1  ;;  %v2458_v48 = vshrl.u32 %v6574_v7, 16 }
  0xee   : > { %v4124_v10 = vsel %vm4017_vm6, %v4114_v40, %v4123_v3  ;;  %v4133_v25 = vsel %vm4017_vm6, %v4123_v3, %v4132_v15  ;;  %v1858_v56 = vsel %vm1326_vm5, %v1855_v33, %v1857_v49  ;;  %v6557_v40 = vld [vmem:[%s6655_s25 + $0x68] sm:$0xff]   ;;  %v4169_v63 = vsel %vm4017_vm6, %v4159_v41, %v4168_v55  ;;  %v6561_v15 = vld [vmem:[%s6655_s25 + $0x20] sm:$0xff]  }
  0xef   : > { %v1860_v61 = vsel %vm1326_vm5, %v1857_v49, %v1859_v54  ;;  %v4182_v3 = vrot.slane %v4180_v58, 2  ;;  %v1861_v38 = vrot.slane %v6557_v40, 1  ;;  %v4666_v19 = vrot.slane %v6561_v15, 3  ;;  %v6578_v40 = vld [vmem:[%s6655_s25 + $0x78] sm:$0xff]  }
  0xf0   : > { %v2449_v33 = vshrl.u32 %v6572_v26, 16  ;;  %v2461_v49 = vshll.u32 %v6574_v7, 16  ;;  %v4673_v50 = vsel %vm4662_vm7, %v4670_v35, %v4672_v57  ;;  %v2460_v58 = vrot.slane %v2458_v48, 1  ;;  %v6579_v26 = vld [vmem:[%s6655_s25 + $0x68] sm:$0xff]  }
  0xf1   : > { %v1862_v8 = vsel %vm1326_vm5, %v1859_v54, %v1861_v38  ;;  %v1864_v12 = vsel %vm1326_vm5, %v1861_v38, %v1863_v5  ;;  %v2470_v54 = vshll.u32 %v6576_v44, 16  ;;  %v6573_v38 = vld [vmem:[%s6655_s25 + $0x50] sm:$0xff]   ;;  %v4684_v35 = vrot.slane %v6579_v26, 3 }
  0xf3   : > { %5890 = vmatmul.mubr.msk.bf16.gmra.mrb[4].mxu1 %vm299_vm1, %v1846_v60  ;;  %6054 = vmatmul.mubr.msk.bf16.gmra.mrb[16].mxu0 %vm299_vm1, %v4115_v4  ;;  %v4177_v60 = vor.u32 %v4176_v53, %v4173_v52  ;;  %v6559_v4 = vld [vmem:[%s6655_s25 + $0x18] sm:$0xff]   ;;  %v2467_v53 = vshrl.u32 %v6576_v44, 16  ;;  %v2515_v44 = vshll.u32 %v6586_v34, 16 }
  0xf4   : > { %5893 = vmatprep.mubr.msk.bf16.mxu1 %vm299_vm1, %v1848_v0  ;;  %6057 = vmatprep.mubr.msk.bf16.mxu0 %vm299_vm1, %v4124_v10  ;;  %v4185_v0 = vrot.slane %v4183_v59, 3  ;;  %v4663_v10 = vrot.slane %v6558_v2, 3  ;;  %v4664_v11 = vrot.slane %v6559_v4, 3  ;;  %v2463_v59 = vrot.slane %v2461_v49, 2 }
  0xf5   : > { %v4178_v1 = vsel %vm4017_vm6, %v4168_v55, %v4177_v60  ;;  %v2469_v62 = vrot.slane %v2467_v53, 1  ;;  %v2476_v2 = vshrl.u32 %v6578_v40, 16  ;;  %v2479_v4 = vshll.u32 %v6578_v40, 16 }
  0xf6   : > { %v4186_v6 = vor.u32 %v4185_v0, %v4182_v3  ;;  %v4665_v22 = vsel %vm4662_vm7, %v4663_v10, %v4664_v11  ;;  %v4667_v27 = vsel %vm4662_vm7, %v4664_v11, %v4666_v19  ;;  %v6580_v3 = vld [vmem:[%s6655_s25 + $0x80] sm:$0xff]   ;;  %v4678_v10 = vrot.slane %v6573_v38, 3 }
  0xf7   : > { %v2481_v13 = vrot.slane %v2479_v4, 2  ;;  %v6590_v4 = vld [vmem:[%s6655_s25 + $0xa0] ss:$0 sps:$4 sm:$0x77]  }
  0xf8   : > { %v4187_v14 = vsel %vm4017_vm6, %v4177_v60, %v4186_v6  ;;  %v6575_v6 = vld [vmem:[%s6655_s25 + $0x58] sm:$0xff]  }
  0xf9   : > { %v4680_v15 = vrot.slane %v6575_v6, 3  ;;  %v4698_v6 = vrot.slane %v6590_v4, 3 }
  0xfb   : > { %5894 = vmatmul.mubr.msk.bf16.gmra.mrb[8].mxu1 %vm299_vm1, %v1850_v16  ;;  %6058 = vmatmul.mubr.msk.bf16.gmra.mrb[20].mxu0 %vm299_vm1, %v4133_v25  ;;  %v1865_v16 = vrot.slane %v6562_v9, 1  ;;  %v6568_v25 = vld [vmem:[%s6655_s25 + $0x90] sm:$0xff]   ;;  %v2488_v9 = vshll.u32 %v6580_v3, 16 }
  0xfc   : > { %5897 = vmatprep.mubr.msk.bf16.mxu1 %vm299_vm1, %v1852_v20  ;;  %6061 = vmatprep.mubr.msk.bf16.mxu0 %vm299_vm1, %v4142_v30  ;;  %v4669_v30 = vsel %vm4662_vm7, %v4666_v19, %v4668_v23  ;;  %v1871_v32 = vrot.slane %v6568_v25, 1  ;;  %v4681_v25 = vsel %vm4662_vm7, %v4678_v10, %v4680_v15 }
  0xfd   : > { %v1866_v20 = vsel %vm1326_vm5, %v1863_v5, %v1865_v16  ;;  %v1868_v24 = vsel %vm1326_vm5, %v1865_v16, %v1867_v18  ;;  %v2490_v17 = vrot.slane %v2488_v9, 2 }
  0xfe   : > { %v1872_v41 = vsel %vm1326_vm5, %v1869_v29, %v1871_v32 }
 0x103   : > { %5898 = vmatmul.mubr.msk.bf16.gmra.mrb[12].mxu1 %vm299_vm1, %v1854_v37  ;;  %6062 = vmatmul.mubr.msk.bf16.gmra.mrb[24].mxu0 %vm299_vm1, %v4151_v46  ;;  %v1870_v37 = vsel %vm1326_vm5, %v1867_v18, %v1869_v29  ;;  %v6569_v46 = vld [vmem:[%s6655_s25 + $0x40] sm:$0xff]   ;;  %v6584_v18 = vld [vmem:[%s6655_s25 + $0x90] sm:$0xff]  }
 0x104   : > { %5901 = vmatprep.mubr.msk.bf16.mxu1 %vm299_vm1, %v1856_v42  ;;  %6065 = vmatprep.mubr.msk.bf16.mxu0 %vm299_vm1, %v4160_v51  ;;  %v2451_v42 = vrot.slane %v2449_v33, 1  ;;  %v6571_v51 = vld [vmem:[%s6655_s25 + $0x48] sm:$0xff]   ;;  %v4674_v55 = vrot.slane %v6569_v46, 3  ;;  %v2503_v28 = vshrl.u32 %v6584_v18, 16  ;;  %v2506_v29 = vshll.u32 %v6584_v18, 16  ;;  %v6583_v46 = vld [vmem:[%s6655_s25 + $0x78] sm:$0xff]  }
 0x105   : > { %v4676_v60 = vrot.slane %v6571_v51, 3  ;;  %v2517_v51 = vrot.slane %v2515_v44, 2 }
 0x106   : > { %v2455_v52 = vor.u32 %v2454_v43, %v2451_v42  ;;  %v4675_v0 = vsel %vm4662_vm7, %v4672_v57, %v4674_v55  ;;  %v2505_v39 = vrot.slane %v2503_v28, 1  ;;  %v2508_v7 = vrot.slane %v2506_v29, 2  ;;  %v7209_v29 = vld [vmem:[%s7301_s2] ss:$0 sm:$0xff] }
 0x107   : > { %v4677_v5 = vsel %vm4662_vm7, %v4674_v55, %v4676_v60  ;;  %v4679_v19 = vsel %vm4662_vm7, %v4676_v60, %v4678_v10  ;;  %v2512_v43 = vshrl.u32 %v6586_v34, 16  ;;  %v6585_v55 = vld [vmem:[%s6655_s25 + $0x80] sm:$0xff]  }
 0x108   : > { %v4690_v40 = vrot.slane %v6585_v55, 3 }
 0x10b   : > { %5902 = vmatmul.mubr.msk.bf16.gmra.mrb[16].mxu1 %vm299_vm1, %v1858_v56  ;;  %6066 = vmatmul.mubr.msk.bf16.gmra.mrb[28].mxu0 %vm299_vm1, %v4169_v63  ;;  %v1874_v56 = vsel %vm1326_vm5, %v1871_v32, %v1873_v47  ;;  %v2472_v63 = vrot.slane %v2470_v54, 2  ;;  %v2509_v47 = vor.u32 %v2508_v7, %v2505_v39 }
 0x10c   : > { %5905 = vmatprep.mubr.msk.bf16.mxu1 %vm299_vm1, %v1860_v61  ;;  %6069 = vmatprep.mubr.msk.bf16.mxu0 %vm299_vm1, %v4178_v1  ;;  %v2456_v61 = vsel %vm2349_vm2, %v6727_v36, %v2455_v52  ;;  %v2464_v1 = vor.u32 %v2463_v59, %v2460_v58  ;;  %v2485_v36 = vshrl.u32 %v6580_v3, 16  ;;  %v6587_v59 = vld [vmem:[%s6655_s25 + $0x88] sm:$0xff]  }
 0x10e   : > { %v2465_v11 = vsel %vm2349_vm2, %v2455_v52, %v2464_v1  ;;  %v4688_v52 = vrot.slane %v6583_v46, 3 }
 0x113   : > { %5906 = vmatmul.mubr.msk.bf16.gmra.mrb[20].mxu1 %vm299_vm1, %v1862_v8  ;;  %6070 = vmatmul.mubr.msk.bf16.gmra.mrb[32].mxu0 %vm299_vm1, %v4187_v14  ;;  %v2473_v8 = vor.u32 %v2472_v63, %v2469_v62  ;;  %v6582_v14 = vld [vmem:[%s6655_s25 + $0x88] sm:$0xff]   ;;  %v4691_v62 = vsel %vm4662_vm7, %v4688_v52, %v4690_v40  ;;  %v6588_v63 = vld [vmem:[%s6655_s25 + $0x90] sm:$0xff]  }
 0x114   : > { %5909 = vmatprep.mubr.msk.bf16.mxu1 %vm299_vm1, %v1864_v12  ;;  %6075 = vmatprep.mubr.msk.bf16.mxu0 %vm299_vm1, %v4665_v22  ;;  %v2478_v12 = vrot.slane %v2476_v2, 1  ;;  %v2487_v22 = vrot.slane %v2485_v36, 1  ;;  %v2494_v23 = vshrl.u32 %v6582_v14, 16  ;;  %v4694_v38 = vrot.slane %v6588_v63, 3 }
 0x115   : > { %v2474_v16 = vsel %vm2349_vm2, %v2464_v1, %v2473_v8 }
 0x116   : > { %v2482_v21 = vor.u32 %v2481_v13, %v2478_v12  ;;  %v2496_v32 = vrot.slane %v2494_v23, 1 }
 0x118   : > { %v2483_v31 = vsel %vm2349_vm2, %v2473_v8, %v2482_v21 }
 0x11b   : > { %5910 = vmatmul.mubr.msk.bf16.gmra.mrb[24].mxu1 %vm299_vm1, %v1866_v20  ;;  %6076 = vmatmul.mubr.msk.bf16.vlgmr.msra.gmra.mrb[0].mxu0 %vm299_vm1, %v4667_v27  ;;  %v6577_v20 = vld [vmem:[%s6655_s25 + $0x60] sm:$0xff]   ;;  %v2491_v27 = vor.u32 %v2490_v17, %v2487_v22 }
 0x11c   : > { %5913 = vmatprep.mubr.msk.bf16.mxu1 %vm299_vm1, %v1868_v24  ;;  %6079 = vmatprep.mubr.msk.bf16.mxu0 %vm299_vm1, %v4669_v30  ;;  %v2497_v24 = vshll.u32 %v6582_v14, 16  ;;  %v4682_v30 = vrot.slane %v6577_v20, 3 }
 0x11e   : > { %v2499_v33 = vrot.slane %v2497_v24, 2  ;;  %v4683_v57 = vsel %vm4662_vm7, %v4680_v15, %v4682_v30 }
 0x120   : > { %v2500_v42 = vor.u32 %v2499_v33, %v2496_v32 }
 0x122   : > { %v2501_v49 = vsel %vm2349_vm2, %v2491_v27, %v2500_v42  ;;  %v2510_v53 = vsel %vm2349_vm2, %v2500_v42, %v2509_v47 }
 0x123   : > { %5914 = vmatmul.mubr.msk.bf16.gmra.mrb[28].mxu1 %vm299_vm1, %v1870_v37  ;;  %6080 = vmatmul.mubr.msk.bf16.gmra.mrb[4].mxu0 %vm299_vm1, %v4671_v45  ;;  %v2492_v37 = vsel %vm2349_vm2, %v2482_v21, %v2491_v27  ;;  %v4685_v45 = vsel %vm4662_vm7, %v4682_v30, %v4684_v35 }
 0x124   : > { %5917 = vmatprep.mubr.msk.bf16.mxu1 %vm299_vm1, %v1872_v41  ;;  %6083 = vmatprep.mubr.msk.bf16.mxu0 %vm299_vm1, %v4673_v50  ;;  %v6581_v41 = vld [vmem:[%s6655_s25 + $0x70] sm:$0xff]   ;;  %v2514_v50 = vrot.slane %v2512_v43, 1 }
 0x125   : > { %v4686_v48 = vrot.slane %v6581_v41, 3 }
 0x127   : > { %v4687_v54 = vsel %vm4662_vm7, %v4684_v35, %v4686_v48  ;;  %v4689_v58 = vsel %vm4662_vm7, %v4686_v48, %v4688_v52 }
 0x12b   : > { %5918 = vmatmul.mubr.msk.bf16.gmra.mrb[32].mxu1 %vm299_vm1, %v1874_v56  ;;  %6084 = vmatmul.mubr.msk.bf16.gmra.mrb[8].mxu0 %vm299_vm1, %v4675_v0  ;;  %v2518_v56 = vor.u32 %v2517_v51, %v2514_v50  ;;  %v6589_v0 = vld [vmem:[%s6655_s25 + $0x98] sm:$0xff]  }
 0x12c   : > { %5943 = vmatprep.mubr.msk.bf16.mxu1 %vm299_vm1, %v2456_v61  ;;  %6087 = vmatprep.mubr.msk.bf16.mxu0 %vm299_vm1, %v4677_v5  ;;  %v4692_v61 = vrot.slane %v6587_v59, 3  ;;  %v4696_v1 = vrot.slane %v6589_v0, 3 }
 0x12d   : > { %v2519_v60 = vsel %vm2349_vm2, %v2509_v47, %v2518_v56 }
 0x12e   : > { %v4693_v3 = vsel %vm4662_vm7, %v4690_v40, %v4692_v61  ;;  %v4695_v2 = vsel %vm4662_vm7, %v4692_v61, %v4694_v38  ;;  %v4697_v5 = vsel %vm4662_vm7, %v4694_v38, %v4696_v1  ;;  %v4699_v8 = vsel %vm4662_vm7, %v4696_v1, %v4698_v6 }
 0x133   : > { %5944 = vmatmul.mubr.msk.bf16.vlgmr.msra.gmra.mrb[20].mxu1 %vm299_vm1, %v2465_v11  ;;  %6088 = vmatmul.mubr.msk.bf16.gmra.mrb[12].mxu0 %vm299_vm1, %v4679_v19 }
 0x134   : > { %5947 = vmatprep.mubr.msk.bf16.mxu1 %vm299_vm1, %v2474_v16  ;;  %6091 = vmatprep.mubr.msk.bf16.mxu0 %vm299_vm1, %v4681_v25 }
 0x13b   : > { %5948 = vmatmul.mubr.msk.bf16.gmra.mrb[24].mxu1 %vm299_vm1, %v2483_v31  ;;  %6092 = vmatmul.mubr.msk.bf16.gmra.mrb[16].mxu0 %vm299_vm1, %v4683_v57 }
 0x13c   : > { %5951 = vmatprep.mubr.msk.bf16.mxu1 %vm299_vm1, %v2492_v37  ;;  %6095 = vmatprep.mubr.msk.bf16.mxu0 %vm299_vm1, %v4685_v45 }
 0x143   : > { %5952 = vmatmul.mubr.msk.bf16.gmra.mrb[28].mxu1 %vm299_vm1, %v2501_v49  ;;  %6096 = vmatmul.mubr.msk.bf16.gmra.mrb[20].mxu0 %vm299_vm1, %v4687_v54 }
 0x144   : > { %5955 = vmatprep.mubr.msk.bf16.mxu1 %vm299_vm1, %v2510_v53  ;;  %6099 = vmatprep.mubr.msk.bf16.mxu0 %vm299_vm1, %v4689_v58 }
 0x14b   : > { %5956 = vmatmul.mubr.msk.bf16.gmra.mrb[32].mxu1 %vm299_vm1, %v2519_v60  ;;  %6100 = vmatmul.mubr.msk.bf16.gmra.mrb[24].mxu0 %vm299_vm1, %v4691_v62 }
 0x14c   : > { %6103 = vmatprep.mubr.msk.bf16.mxu0 %vm299_vm1, %v4693_v3 }
 0x153   : > { %6104 = vmatmul.mubr.msk.bf16.gmra.mrb[28].mxu0 %vm299_vm1, %v4695_v2 }
 0x154   : > { %6107 = vmatprep.mubr.msk.bf16.mxu0 %vm299_vm1, %v4697_v5 }
 0x15b   : > { %6108 = vmatmul.mubr.msk.bf16.gmra.mrb[32].mxu0 %vm299_vm1, %v4699_v8 }
 0x1be   : > { %v5887_v36 = vpop.f32.mrb[0].mxu1 }
 0x1bf   : > { %v1966_v9 = vpop.f32.mrb[1].mxu1 }
 0x1c0   : > { %v5888_v10 = vpop.f32.mrb[2].mxu1 }
 0x1c1   : > { %v1969_v11 = vpop.f32.mrb[3].mxu1 }
 0x1c6   : > { %v5891_v12 = vpop.f32.mrb[4].mxu1 }
 0x1c7   : > { %v1982_v13 = vpop.f32.mrb[5].mxu1 }
 0x1c8   : > { %v5892_v14 = vpop.f32.mrb[6].mxu1 }
 0x1c9   : > { %v1985_v15 = vpop.f32.mrb[7].mxu1 }
 0x1ce   : > { %v5895_v16 = vpop.f32.mrb[8].mxu1 }
 0x1cf   : > { %v1998_v22 = vpop.f32.mrb[9].mxu1 }
 0x1d0   : > { %v5896_v17 = vpop.f32.mrb[10].mxu1 }
 0x1d1   : > { %v2001_v18 = vpop.f32.mrb[11].mxu1 }
 0x1d6   : > { %v7189_v19 = vpop.f32.mrb[12].mxu1 }
 0x1d7   : > { %v7191_v20 = vpop.f32.mrb[13].mxu1 }
 0x1d8   : > { %v7193_v21 = vpop.f32.mrb[14].mxu1 }
 0x1d9   : > { %v7195_v23 = vpop.f32.mrb[15].mxu1 }
 0x1de   : > { %v7197_v24 = vpop.f32.mrb[16].mxu1 }
 0x1df   : > { %v7199_v25 = vpop.f32.mrb[17].mxu1 }
 0x1e0   : > { %v7201_v26 = vpop.f32.mrb[18].mxu1 }
 0x1e1   : > { %v7203_v27 = vpop.f32.mrb[19].mxu1 }
 0x1ee   : > { %v6077_v28 = vpop.f32.mrb[0].mxu0 }
 0x1ef   : > { %v6113_v30 = vadd.f32 %v6077_v28, %v5887_v36  ;;  %v4791_v31 = vpop.f32.mrb[1].mxu0 }
 0x1f0   : > { %v6114_v32 = vadd.f32 %v4791_v31, %v1966_v9  ;;  %v6078_v33 = vpop.f32.mrb[2].mxu0 }
 0x1f1   : > { %v5087_v34 = vadd.f32 %v6113_v30, %v7209_v29  ;;  %v6115_v35 = vadd.f32 %v6078_v33, %v5888_v10  ;;  %v4794_v37 = vpop.f32.mrb[3].mxu0 }
 0x1f2   : > { %v5085_v39 = vadd.f32 %v6114_v32, %v7209_v29  ;;  %v6116_v7 = vadd.f32 %v4794_v37, %v1969_v11 }
 0x1f3   : > { %v5123_v57 = vmax.f32 %v5087_v34, 0.0  ;;  %v5088_v41 = vadd.f32 %v6115_v35, %v7209_v29 }
 0x1f4   : > { %v5121_v42 = vmax.f32 %v5085_v39, 0.0  ;;  %v5086_v43 = vadd.f32 %v6116_v7, %v7209_v29 }
 0x1f5   : > { %5159 = vst [vmem:[%s7215_s18 + $0x10] sm:$0xff] %v5123_v57  ;;  %v5124_v44 = vmax.f32 %v5088_v41, 0.0 }
 0x1f6   : > { %5157 = vst [vmem:[%s7215_s18] sm:$0xff] %v5121_v42  ;;  %v5122_v45 = vmax.f32 %v5086_v43, 0.0  ;;  %v6081_v46 = vpop.f32.mrb[4].mxu0 }
 0x1f7   : > { %5160 = vst [vmem:[%s7215_s18 + $0x18] sm:$0xff] %v5124_v44  ;;  %v6117_v47 = vadd.f32 %v6081_v46, %v5891_v12  ;;  %v4807_v48 = vpop.f32.mrb[5].mxu0 }
 0x1f8   : > { %5158 = vst [vmem:[%s7215_s18 + $0x8] sm:$0xff] %v5122_v45  ;;  %v6118_v49 = vadd.f32 %v4807_v48, %v1982_v13  ;;  %v6082_v50 = vpop.f32.mrb[6].mxu0 }
 0x1f9   : > { %v5091_v51 = vadd.f32 %v6117_v47, %v7209_v29  ;;  %v6119_v52 = vadd.f32 %v6082_v50, %v5892_v14  ;;  %v4810_v53 = vpop.f32.mrb[7].mxu0 }
 0x1fa   : > { %v5089_v54 = vadd.f32 %v6118_v49, %v7209_v29  ;;  %v6120_v55 = vadd.f32 %v4810_v53, %v1985_v15 }
 0x1fb   : > { %v5127_v56 = vmax.f32 %v5091_v51, 0.0  ;;  %v5092_v58 = vadd.f32 %v6119_v52, %v7209_v29 }
 0x1fc   : > { %v5125_v59 = vmax.f32 %v5089_v54, 0.0  ;;  %v5090_v40 = vadd.f32 %v6120_v55, %v7209_v29 }
 0x1fd   : > { %5163 = vst [vmem:[%s7215_s18 + $0x30] sm:$0xff] %v5127_v56  ;;  %v5128_v60 = vmax.f32 %v5092_v58, 0.0 }
 0x1fe   : > { %5161 = vst [vmem:[%s7215_s18 + $0x20] sm:$0xff] %v5125_v59  ;;  %v5126_v61 = vmax.f32 %v5090_v40, 0.0  ;;  %v6085_v62 = vpop.f32.mrb[8].mxu0 }
 0x1ff   : > { %5164 = vst [vmem:[%s7215_s18 + $0x38] sm:$0xff] %v5128_v60  ;;  %v6121_v63 = vadd.f32 %v6085_v62, %v5895_v16  ;;  %v4823_v3 = vpop.f32.mrb[9].mxu0 }
 0x200   : > { %5162 = vst [vmem:[%s7215_s18 + $0x28] sm:$0xff] %v5126_v61  ;;  %v6122_v0 = vadd.f32 %v4823_v3, %v1998_v22  ;;  %v6086_v38 = vpop.f32.mrb[10].mxu0 }
 0x201   : > { %v5095_v1 = vadd.f32 %v6121_v63, %v7209_v29  ;;  %v6123_v2 = vadd.f32 %v6086_v38, %v5896_v17  ;;  %v4826_v4 = vpop.f32.mrb[11].mxu0 }
 0x202   : > { %v5093_v5 = vadd.f32 %v6122_v0, %v7209_v29  ;;  %v6124_v6 = vadd.f32 %v4826_v4, %v2001_v18 }
 0x203   : > { %v5131_v36 = vmax.f32 %v5095_v1, 0.0  ;;  %v5096_v9 = vadd.f32 %v6123_v2, %v7209_v29 }
 0x204   : > { %v5129_v11 = vmax.f32 %v5093_v5, 0.0  ;;  %v5094_v12 = vadd.f32 %v6124_v6, %v7209_v29 }
 0x205   : > { %5167 = vst [vmem:[%s7215_s18 + $0x50] sm:$0xff] %v5131_v36  ;;  %v5132_v14 = vmax.f32 %v5096_v9, 0.0 }
 0x206   : > { %v5945_v8 = vpop.f32.mrb[20].mxu1  ;;  %5165 = vst [vmem:[%s7215_s18 + $0x40] sm:$0xff] %v5129_v11  ;;  %v5130_v16 = vmax.f32 %v5094_v12, 0.0  ;;  %v6089_v22 = vpop.f32.mrb[12].mxu0 }
 0x207   : > { %v2691_v10 = vpop.f32.mrb[21].mxu1  ;;  %5168 = vst [vmem:[%s7215_s18 + $0x58] sm:$0xff] %v5132_v14  ;;  %v6125_v17 = vadd.f32 %v6089_v22, %v7189_v19  ;;  %v4839_v18 = vpop.f32.mrb[13].mxu0 }
 0x208   : > { %v5946_v13 = vpop.f32.mrb[22].mxu1  ;;  %5166 = vst [vmem:[%s7215_s18 + $0x48] sm:$0xff] %v5130_v16  ;;  %v6126_v28 = vadd.f32 %v4839_v18, %v7191_v20  ;;  %v6090_v30 = vpop.f32.mrb[14].mxu0 }
 0x209   : > { %v2694_v15 = vpop.f32.mrb[23].mxu1  ;;  %v5099_v31 = vadd.f32 %v6125_v17, %v7209_v29  ;;  %v6127_v32 = vadd.f32 %v6090_v30, %v7193_v21  ;;  %v4842_v33 = vpop.f32.mrb[15].mxu0 }
 0x20a   : > { %v5097_v34 = vadd.f32 %v6126_v28, %v7209_v29  ;;  %v6128_v35 = vadd.f32 %v4842_v33, %v7195_v23 }
 0x20b   : > { %v5135_v19 = vmax.f32 %v5099_v31, 0.0  ;;  %v5100_v39 = vadd.f32 %v6127_v32, %v7209_v29 }
 0x20c   : > { %v5133_v57 = vmax.f32 %v5097_v34, 0.0  ;;  %v5098_v20 = vadd.f32 %v6128_v35, %v7209_v29 }
 0x20d   : > { %5171 = vst [vmem:[%s7215_s18 + $0x70] sm:$0xff] %v5135_v19  ;;  %v5136_v42 = vmax.f32 %v5100_v39, 0.0 }
 0x20e   : > { %v5949_v37 = vpop.f32.mrb[24].mxu1  ;;  %5169 = vst [vmem:[%s7215_s18 + $0x60] sm:$0xff] %v5133_v57  ;;  %v5134_v21 = vmax.f32 %v5098_v20, 0.0  ;;  %v6093_v44 = vpop.f32.mrb[16].mxu0 }
 0x20f   : > { %v2707_v7 = vpop.f32.mrb[25].mxu1  ;;  %5172 = vst [vmem:[%s7215_s18 + $0x78] sm:$0xff] %v5136_v42  ;;  %v6129_v45 = vadd.f32 %v6093_v44, %v7197_v24  ;;  %v4855_v23 = vpop.f32.mrb[17].mxu0 }
 0x210   : > { %v5950_v41 = vpop.f32.mrb[26].mxu1  ;;  %5170 = vst [vmem:[%s7215_s18 + $0x68] sm:$0xff] %v5134_v21  ;;  %v6130_v46 = vadd.f32 %v4855_v23, %v7199_v25  ;;  %v6094_v47 = vpop.f32.mrb[18].mxu0 }
 0x211   : > { %v2710_v43 = vpop.f32.mrb[27].mxu1  ;;  %v5103_v48 = vadd.f32 %v6129_v45, %v7209_v29  ;;  %v6131_v49 = vadd.f32 %v6094_v47, %v7201_v26  ;;  %v4858_v50 = vpop.f32.mrb[19].mxu0 }
 0x212   : > { %v5101_v51 = vadd.f32 %v6130_v46, %v7209_v29  ;;  %v6132_v52 = vadd.f32 %v4858_v50, %v7203_v27 }
 0x213   : > { %v5139_v24 = vmax.f32 %v5103_v48, 0.0  ;;  %v5104_v54 = vadd.f32 %v6131_v49, %v7209_v29 }
 0x214   : > { %v5137_v56 = vmax.f32 %v5101_v51, 0.0  ;;  %v5102_v25 = vadd.f32 %v6132_v52, %v7209_v29 }
 0x215   : > { %5175 = vst [vmem:[%s7215_s18 + $0x90] sm:$0xff] %v5139_v24  ;;  %v5140_v59 = vmax.f32 %v5104_v54, 0.0 }
 0x216   : > { %v5953_v53 = vpop.f32.mrb[28].mxu1  ;;  %5173 = vst [vmem:[%s7215_s18 + $0x80] sm:$0xff] %v5137_v56  ;;  %v5138_v26 = vmax.f32 %v5102_v25, 0.0  ;;  %v6097_v60 = vpop.f32.mrb[20].mxu0 }
 0x217   : > { %v2723_v55 = vpop.f32.mrb[29].mxu1  ;;  %5176 = vst [vmem:[%s7215_s18 + $0x98] sm:$0xff] %v5140_v59  ;;  %v6133_v61 = vadd.f32 %v6097_v60, %v5945_v8  ;;  %v4871_v62 = vpop.f32.mrb[21].mxu0 }
 0x218   : > { %v5954_v58 = vpop.f32.mrb[30].mxu1  ;;  %5174 = vst [vmem:[%s7215_s18 + $0x88] sm:$0xff] %v5138_v26  ;;  %v6134_v27 = vadd.f32 %v4871_v62, %v2691_v10  ;;  %v6098_v63 = vpop.f32.mrb[22].mxu0 }
 0x219   : > { %v2726_v40 = vpop.f32.mrb[31].mxu1  ;;  %v5107_v3 = vadd.f32 %v6133_v61, %v7209_v29  ;;  %v6135_v0 = vadd.f32 %v6098_v63, %v5946_v13  ;;  %v4874_v38 = vpop.f32.mrb[23].mxu0 }
 0x21a   : > { %v5105_v1 = vadd.f32 %v6134_v27, %v7209_v29  ;;  %v6136_v2 = vadd.f32 %v4874_v38, %v2694_v15 }
 0x21b   : > { %v5143_v5 = vmax.f32 %v5107_v3, 0.0  ;;  %v5108_v6 = vadd.f32 %v6135_v0, %v7209_v29 }
 0x21c   : > { %v5141_v36 = vmax.f32 %v5105_v1, 0.0  ;;  %v5106_v9 = vadd.f32 %v6136_v2, %v7209_v29 }
 0x21d   : > { %5179 = vst [vmem:[%s7215_s18 + $0xb0] sm:$0xff] %v5143_v5  ;;  %v5144_v11 = vmax.f32 %v5108_v6, 0.0 }
 0x21e   : > { %v5957_v4 = vpop.f32.mrb[32].mxu1  ;;  %5177 = vst [vmem:[%s7215_s18 + $0xa0] sm:$0xff] %v5141_v36  ;;  %v5142_v13 = vmax.f32 %v5106_v9, 0.0  ;;  %v6101_v14 = vpop.f32.mrb[24].mxu0 }
 0x21f   : > { %v2739_v8 = vpop.f32.mrb[33].mxu1  ;;  %5180 = vst [vmem:[%s7215_s18 + $0xb8] sm:$0xff] %v5144_v11  ;;  %v6137_v16 = vadd.f32 %v6101_v14, %v5949_v37  ;;  %v4887_v15 = vpop.f32.mrb[25].mxu0 }
 0x220   : > { %v5958_v10 = vpop.f32.mrb[34].mxu1  ;;  %5178 = vst [vmem:[%s7215_s18 + $0xa8] sm:$0xff] %v5142_v13  ;;  %v6138_v22 = vadd.f32 %v4887_v15, %v2707_v7  ;;  %v6102_v17 = vpop.f32.mrb[26].mxu0 }
 0x221   : > { %v2742_v12 = vpop.f32.mrb[35].mxu1  ;;  %v5111_v18 = vadd.f32 %v6137_v16, %v7209_v29  ;;  %v6139_v28 = vadd.f32 %v6102_v17, %v5950_v41  ;;  %v4890_v30 = vpop.f32.mrb[27].mxu0 }
 0x222   : > { %v5109_v31 = vadd.f32 %v6138_v22, %v7209_v29  ;;  %v6140_v32 = vadd.f32 %v4890_v30, %v2710_v43 }
 0x223   : > { %v5147_v33 = vmax.f32 %v5111_v18, 0.0  ;;  %v5112_v34 = vadd.f32 %v6139_v28, %v7209_v29 }
 0x224   : > { %v5145_v35 = vmax.f32 %v5109_v31, 0.0  ;;  %v5110_v37 = vadd.f32 %v6140_v32, %v7209_v29 }
 0x225   : > { %5183 = vst [vmem:[%s7215_s18 + $0xd0] sm:$0xff] %v5147_v33  ;;  %v5148_v19 = vmax.f32 %v5112_v34, 0.0 }
 0x226   : > { %5181 = vst [vmem:[%s7215_s18 + $0xc0] sm:$0xff] %v5145_v35  ;;  %v5146_v39 = vmax.f32 %v5110_v37, 0.0  ;;  %v6105_v7 = vpop.f32.mrb[28].mxu0 }
 0x227   : > { %5184 = vst [vmem:[%s7215_s18 + $0xd8] sm:$0xff] %v5148_v19  ;;  %v6141_v57 = vadd.f32 %v6105_v7, %v5953_v53  ;;  %v4903_v20 = vpop.f32.mrb[29].mxu0 }
 0x228   : > { %5182 = vst [vmem:[%s7215_s18 + $0xc8] sm:$0xff] %v5146_v39  ;;  %v6142_v41 = vadd.f32 %v4903_v20, %v2723_v55  ;;  %v6106_v42 = vpop.f32.mrb[30].mxu0 }
 0x229   : > { %v5115_v43 = vadd.f32 %v6141_v57, %v7209_v29  ;;  %v6143_v21 = vadd.f32 %v6106_v42, %v5954_v58  ;;  %v4906_v44 = vpop.f32.mrb[31].mxu0 }
 0x22a   : > { %v5113_v45 = vadd.f32 %v6142_v41, %v7209_v29  ;;  %v6144_v23 = vadd.f32 %v4906_v44, %v2726_v40 }
 0x22b   : > { %v5151_v46 = vmax.f32 %v5115_v43, 0.0  ;;  %v5116_v47 = vadd.f32 %v6143_v21, %v7209_v29 }
 0x22c   : > { %v5149_v48 = vmax.f32 %v5113_v45, 0.0  ;;  %v5114_v49 = vadd.f32 %v6144_v23, %v7209_v29 }
 0x22d   : > { %5187 = vst [vmem:[%s7215_s18 + $0xf0] sm:$0xff] %v5151_v46  ;;  %v5152_v50 = vmax.f32 %v5116_v47, 0.0 }
 0x22e   : > { %5185 = vst [vmem:[%s7215_s18 + $0xe0] sm:$0xff] %v5149_v48  ;;  %v5150_v51 = vmax.f32 %v5114_v49, 0.0  ;;  %v6109_v52 = vpop.f32.mrb[32].mxu0 }
 0x22f   : > { %5188 = vst [vmem:[%s7215_s18 + $0xf8] sm:$0xff] %v5152_v50  ;;  %v6145_v53 = vadd.f32 %v6109_v52, %v5957_v4  ;;  %v4919_v24 = vpop.f32.mrb[33].mxu0 }
 0x230   : > { %5186 = vst [vmem:[%s7215_s18 + $0xe8] sm:$0xff] %v5150_v51  ;;  %v6146_v54 = vadd.f32 %v4919_v24, %v2739_v8  ;;  %v6110_v55 = vpop.f32.mrb[34].mxu0 }
 0x231   : > { %v5119_v56 = vadd.f32 %v6145_v53, %v7209_v29  ;;  %v6147_v25 = vadd.f32 %v6110_v55, %v5958_v10  ;;  %v4922_v58 = vpop.f32.mrb[35].mxu0 }
 0x232   : > { %v5117_v59 = vadd.f32 %v6146_v54, %v7209_v29  ;;  %v6148_v40 = vadd.f32 %v4922_v58, %v2742_v12 }
 0x233   : > { %v5155_v26 = vmax.f32 %v5119_v56, 0.0  ;;  %v5120_v60 = vadd.f32 %v6147_v25, %v7209_v29 }
 0x234   : > { %v5153_v61 = vmax.f32 %v5117_v59, 0.0  ;;  %v5118_v62 = vadd.f32 %v6148_v40, %v7209_v29 }
 0x235   : > { %5191 = vst [vmem:[%s7215_s18 + $0x110] sm:$0xff] %v5155_v26  ;;  %v5156_v27 = vmax.f32 %v5120_v60, 0.0 }
 0x236   : > { %5189 = vst [vmem:[%s7215_s18 + $0x100] sm:$0xff] %v5153_v61  ;;  %v5154_v63 = vmax.f32 %v5118_v62, 0.0 }
 0x237   : > { %5192 = vst [vmem:[%s7215_s18 + $0x118] sm:$0xff] %v5156_v27 }
 0x238   : > { %5190 = vst [vmem:[%s7215_s18 + $0x108] sm:$0xff] %v5154_v63 }
 0x239 PF: > { %s13_s12 = sadd.s32 1, %s6598_s12  }
 0x23a   : > { %p10_p4 = scmp.ge.s32.totalorder %s13_s12, 4  }
 0x23c   :  { %12 = sbr.rel (!%p10_p4) target bundleno = 1 (0x1), region = 70 }

</bundles_post_ra>
